<compile_context>
chip_gen: v5e
topology: v5e:2x2
jax: 0.10.0
libtpu: 0.0.40
codegen_flags: <defaults>
</compile_context>

<pallas_src>
import functools

import jax
import jax.numpy as jnp
from jax.experimental import pallas as pl
from jax.experimental.pallas import tpu as pltpu

NEG_SLOPE = 0.01  # nn.LeakyReLU default


def _round_up(x, m):
    return ((x + m - 1) // m) * m


def _mlp(x, params):
    """SimpleNetwork forward on (fused) weights: [W0, b0, W1, b1, ...];
    LeakyReLU after every layer except fc_out."""
    n_layers = len(params) // 2
    for i in range(n_layers):
        W = params[2 * i]
        b = params[2 * i + 1]
        x = jnp.dot(x, W, preferred_element_type=jnp.float32) + b
        if i < n_layers - 1:
            x = jnp.where(x >= 0, x, NEG_SLOPE * x)
    return x


def _message_kernel(n_net1, n_net2, num_heads, fea_len,
                    fea_ref, St_ref, logwfac_ref, elem_ref, *rest):
    net1_refs = rest[:n_net1]
    net2_refs = rest[n_net1:n_net1 + n_net2]
    out_ref = rest[n_net1 + n_net2]
    m_ref = rest[n_net1 + n_net2 + 1]    # (1, H)         running per-head max
    acc_ref = rest[n_net1 + n_net2 + 2]  # (N, H*F + H)   pooled blocks | gsum

    j = pl.program_id(0)

    @pl.when(j == 0)
    def _init():
        m_ref[...] = jnp.full(m_ref.shape, -1e30, dtype=jnp.float32)
        acc_ref[...] = jnp.zeros(acc_ref.shape, dtype=jnp.float32)

    fea = fea_ref[...]            # (Mt, 2F) f32
    logwfac = logwfac_ref[...]    # (Mt, H)  f32  weights**pow folded into exponent

    # ---- fused gate+msg MLP: one wide matmul per layer ----------------------
    if n_net2 == 0:
        both = _mlp(fea, [r[...] for r in net1_refs])     # (Mt, H*F + H)
        msg = both[:, :num_heads * fea_len]               # (Mt, H*F)
        gate = both[:, num_heads * fea_len:]              # (Mt, H)
    else:
        msg = _mlp(fea, [r[...] for r in net1_refs])      # (Mt, H*F)
        gate = _mlp(fea, [r[...] for r in net2_refs])     # (Mt, H)

    # ---- running (global) per-head max; shift-invariant softmax -------------
    tile_max = jnp.max(gate, axis=0, keepdims=True)       # (1, H)
    m_new = jnp.maximum(m_ref[...], tile_max)
    alpha = jnp.exp(m_ref[...] - m_new)                   # (1, H) rescale of old acc
    m_ref[...] = m_new

    g = jnp.exp(gate - m_new + logwfac)                   # (Mt, H) un-normalized gate

    # ---- one wide scatter-add over the edge tile (St columns are 0/1) -------
    zs = [g[:, h:h + 1] * msg[:, h * fea_len:(h + 1) * fea_len]
          for h in range(num_heads)]
    zs.append(g)
    Z = jnp.concatenate(zs, axis=1)                       # (Mt, H*F + H)
    partial = jnp.dot(St_ref[...], Z,                     # bf16 x f32, f32 accum
                      preferred_element_type=jnp.float32)  # (N, H*F + H)

    scale_parts = [jnp.broadcast_to(alpha[:, h:h + 1], (1, fea_len))
                   for h in range(num_heads)]
    scale_parts.append(alpha)
    scale = jnp.concatenate(scale_parts, axis=1)          # (1, H*F + H)
    acc_ref[...] = acc_ref[...] * scale + partial

    # ---- finalize: normalize AFTER pooling, fold 1/H, add residual ----------
    @pl.when(j == pl.num_programs(0) - 1)
    def _finalize():
        acc = acc_ref[...]
        gsum = acc[:, num_heads * fea_len:]                        # (N, H)
        denom = gsum * num_heads + (1e-10 * num_heads)             # folds head mean
        out = elem_ref[...]
        for h in range(num_heads):
            out = out + acc[:, h * fea_len:(h + 1) * fea_len] / denom[:, h:h + 1]
        out_ref[...] = out


# ----------------------------- wrapper -----------------------------
def _block_diag(mats):
    rows = sum(m.shape[0] for m in mats)
    cols = sum(m.shape[1] for m in mats)
    out = jnp.zeros((rows, cols), dtype=mats[0].dtype)
    r = c = 0
    for m in mats:
        out = out.at[r:r + m.shape[0], c:c + m.shape[1]].set(m)
        r += m.shape[0]
        c += m.shape[1]
    return out


def _fuse_networks(nets):
    """Fuse SimpleNetworks sharing the same input into one wide MLP.
    Layer 0: concat weights along the output dim; deeper layers: block-diag.
    LeakyReLU is elementwise so per-net semantics are preserved exactly."""
    n_layers = len(nets[0]) // 2
    fused = []
    for i in range(n_layers):
        Ws = [p[2 * i] for p in nets]
        bs = [p[2 * i + 1] for p in nets]
        Wf = jnp.concatenate(Ws, axis=1) if i == 0 else _block_diag(Ws)
        bf = jnp.concatenate(bs, axis=1)
        fused += [Wf, bf]
    return fused


def message_layer_pallas(elem_weights, elem_in_fea, self_fea_idx, nbr_fea_idx,
                         params, *, edge_tile=512):
    N, F = elem_in_fea.shape
    M = self_fea_idx.shape[0]
    H = len(params["pow"])

    # ----- plain-JAX glue: edge gathers + log weight factor -----
    fea = jnp.concatenate(
        [elem_in_fea[self_fea_idx], elem_in_fea[nbr_fea_idx]], axis=1)   # (M, 2F)
    wnbr = elem_weights[nbr_fea_idx]                                     # (M, 1)
    logw_cols = []
    for p in params["pow"]:
        if p > 0:
            logw_cols.append(p * jnp.log(wnbr))
        else:
            logw_cols.append(-jnp.log(wnbr ** abs(p) + 1e-10))
    logwfac = jnp.concatenate(logw_cols, axis=1).astype(jnp.float32)     # (M, H)

    # ----- edge tiling: St blocks need a multiple of 128 lanes -----
    Mt = _round_up(min(edge_tile, _round_up(M, 128)), 128)
    M_pad = _round_up(M, Mt)
    num_tiles = M_pad // Mt
    pad = M_pad - M
    if pad:
        fea = jnp.pad(fea, ((0, pad), (0, 0)))
        logwfac = jnp.pad(logwfac, ((0, pad), (0, 0)))
    idx_pad = jnp.pad(self_fea_idx, (0, pad), constant_values=-1)

    # transposed one-hot built directly (no one_hot + transpose, no S at all);
    # bf16 is exact for 0/1; padded edge columns are all-zero -> no contribution
    St = (jnp.arange(N, dtype=jnp.int32)[:, None]
          == idx_pad[None, :]).astype(jnp.bfloat16)                      # (N, M_pad)

    # ----- fuse per-head gate/msg SimpleNetworks into one wide MLP -----
    if len(params["gate"][0]) == len(params["msg"][0]):
        net1 = _fuse_networks(list(params["msg"]) + list(params["gate"]))
        net2 = []
    else:
        # TODO(synk): gate/msg nets of different depth are only fused per family.
        net1 = _fuse_networks(params["msg"])
        net2 = _fuse_networks(params["gate"])

    inputs = [fea, St, logwfac, elem_in_fea] + net1 + net2
    in_specs = ([pl.BlockSpec((Mt, 2 * F), lambda j: (j, 0)),   # fea edge tile
                 pl.BlockSpec((N, Mt), lambda j: (0, j)),       # St  edge tile
                 pl.BlockSpec((Mt, H), lambda j: (j, 0)),       # logwfac edge tile
                 pl.BlockSpec((N, F), lambda j: (0, 0))]        # residual (constant)
                + [pl.BlockSpec(w.shape, lambda j: (0, 0)) for w in net1 + net2])

    # scoped-VMEM limit sized to the double-buffered block footprint (+ headroom)
    streamed = 2 * (Mt * 2 * F * 4 + N * Mt * 2 + Mt * H * 4)
    resident = (2 * sum(int(w.size) * 4 for w in net1 + net2)
                + 4 * N * F * 4 + N * (H * F + H) * 4)
    vmem_limit = min(64 << 20, max(32 << 20, 4 * (streamed + resident)))

    kernel = functools.partial(_message_kernel, len(net1), len(net2), H, F)

    out = pl.pallas_call(
        kernel,
        out_shape=jax.ShapeDtypeStruct((N, F), jnp.float32),
        grid_spec=pltpu.PrefetchScalarGridSpec(
            num_scalar_prefetch=0,
            grid=(num_tiles,),
            in_specs=in_specs,
            out_specs=pl.BlockSpec((N, F), lambda j: (0, 0)),
            scratch_shapes=[pltpu.VMEM((1, H), jnp.float32),
                            pltpu.VMEM((N, H * F + H), jnp.float32)],
        ),
        compiler_params=pltpu.CompilerParams(
            dimension_semantics=("arbitrary",),
            vmem_limit_bytes=vmem_limit),
    )(*inputs)
    return out


# ----------------------------- pure-JAX reference -----------------------------
def ref_message_layer(elem_weights, elem_in_fea, self_fea_idx, nbr_fea_idx, params):
    N, F = elem_in_fea.shape
    fea = jnp.concatenate(
        [elem_in_fea[self_fea_idx], elem_in_fea[nbr_fea_idx]], axis=1)
    wnbr = elem_weights[nbr_fea_idx]
    heads = []
    for gparams, mparams, p in zip(params["gate"], params["msg"], params["pow"]):
        gate = _mlp(fea, gparams)
        gmax = jax.ops.segment_max(gate, self_fea_idx, num_segments=N)
        gate = gate - gmax[self_fea_idx]
        if p > 0:
            gate = (wnbr ** p) * jnp.exp(gate)
        else:
            gate = (1.0 / (wnbr ** abs(p) + 1e-10)) * jnp.exp(gate)
        gsum = jax.ops.segment_sum(gate, self_fea_idx, num_segments=N)
        gate = gate / (gsum[self_fea_idx] + 1e-10)
        x = _mlp(fea, mparams)
        heads.append(jax.ops.segment_sum(gate * x, self_fea_idx, num_segments=N))
    return jnp.mean(jnp.stack(heads, axis=0), axis=0) + elem_in_fea


# ----------------------------- parameter init -----------------------------
def init_simple_network(key, input_dim, output_dim, hidden_dims):
    """nn.Linear-style uniform init; returns flat [W0, b0, W1, b1, ...]."""
    dims = [input_dim] + list(hidden_dims) + [output_dim]
    params = []
    for i in range(len(dims) - 1):
        key, k1, k2 = jax.random.split(key, 3)
        bound = 1.0 / (dims[i] ** 0.5)
        W = jax.random.uniform(k1, (dims[i], dims[i + 1]),
                               minval=-bound, maxval=bound, dtype=jnp.float32)
        b = jax.random.uniform(k2, (1, dims[i + 1]),
                               minval=-bound, maxval=bound, dtype=jnp.float32)
        params += [W, b]
    return key, params


if __name__ == "__main__":
    elem_fea_len = 32        # F
    elem_heads = 3           # H
    elem_gate = [32]         # gate_nn hidden dims
    elem_msg = [64]          # message_nn hidden dims

    n_crystals = 4
    elems_per_crystal = 4
    N = n_crystals * elems_per_crystal          # 16 nodes
    # edges: fully-connected (incl. self) within each crystal -> M = 64
    self_idx, nbr_idx = [], []
    for c in range(n_crystals):
        base = c * elems_per_crystal
        for i in range(elems_per_crystal):
            for j in range(elems_per_crystal):
                self_idx.append(base + i)
                nbr_idx.append(base + j)
    self_fea_idx = jnp.array(self_idx, dtype=jnp.int32)
    nbr_fea_idx = jnp.array(nbr_idx, dtype=jnp.int32)

    key = jax.random.PRNGKey(0)
    key, k1, k2 = jax.random.split(key, 3)
    elem_in_fea = jax.random.normal(k1, (N, elem_fea_len), dtype=jnp.float32)
    elem_weights = jax.random.uniform(k2, (N, 1), minval=0.1, maxval=1.0,
                                      dtype=jnp.float32)

    # deterministic per-head pow parameters (exercise both branches of the
    # WeightedAttentionPooling sign check)
    pow_vals = [0.7, -0.4, 1.3]
    params = {"gate": [], "msg": [], "pow": pow_vals}
    for _ in range(elem_heads):
        key, gparams = init_simple_network(key, 2 * elem_fea_len, 1, elem_gate)
        key, mparams = init_simple_network(key, 2 * elem_fea_len, elem_fea_len, elem_msg)
        params["gate"].append(gparams)
        params["msg"].append(mparams)

    out = message_layer_pallas(elem_weights, elem_in_fea,
                               self_fea_idx, nbr_fea_idx, params)
    out = jax.block_until_ready(out)

    ref = ref_message_layer(elem_weights, elem_in_fea,
                            self_fea_idx, nbr_fea_idx, params)
    assert out.shape == (N, elem_fea_len)
    assert jnp.allclose(out, ref, atol=1e-4, rtol=1e-4), \
        f"max abs err {jnp.max(jnp.abs(out - ref))}"
    print("KERNEL_OK")
</pallas_src>

<mosaic_0001>
module attributes {stable_mosaic.version = 11 : i64} {
  func.func @_message_kernel(%arg0: i32, %arg1: memref<128x64xf32, #tpu.memory_space<vmem>>, %arg2: memref<16x128xbf16, #tpu.memory_space<vmem>>, %arg3: memref<128x3xf32, #tpu.memory_space<vmem>>, %arg4: memref<16x32xf32, #tpu.memory_space<vmem>>, %arg5: memref<64x288xf32, #tpu.memory_space<vmem>>, %arg6: memref<1x288xf32, #tpu.memory_space<vmem>>, %arg7: memref<288x99xf32, #tpu.memory_space<vmem>>, %arg8: memref<1x99xf32, #tpu.memory_space<vmem>>, %arg9: memref<16x32xf32, #tpu.memory_space<vmem>>, %arg10: memref<1x3xf32, #tpu.memory_space<vmem>>, %arg11: memref<16x99xf32, #tpu.memory_space<vmem>>) attributes {dimension_semantics = [#tpu.dimension_semantics<arbitrary>], iteration_bounds = array<i64: 1>, scalar_prefetch = 0 : i64, scratch_operands = 2 : i64, tpu.core_type = #tpu.core_type<tc>, window_params = [{transform_indices = @transform_0, window_bounds = array<i64: 128, 64>}, {transform_indices = @transform_1, window_bounds = array<i64: 16, 128>}, {transform_indices = @transform_2, window_bounds = array<i64: 128, 3>}, {pipeline_mode = #tpu.pipeline_mode<synchronous>, transform_indices = @transform_3, window_bounds = array<i64: 16, 32>}, {pipeline_mode = #tpu.pipeline_mode<synchronous>, transform_indices = @transform_4, window_bounds = array<i64: 64, 288>}, {pipeline_mode = #tpu.pipeline_mode<synchronous>, transform_indices = @transform_5, window_bounds = array<i64: 1, 288>}, {pipeline_mode = #tpu.pipeline_mode<synchronous>, transform_indices = @transform_6, window_bounds = array<i64: 288, 99>}, {pipeline_mode = #tpu.pipeline_mode<synchronous>, transform_indices = @transform_7, window_bounds = array<i64: 1, 99>}, {pipeline_mode = #tpu.pipeline_mode<synchronous>, transform_indices = @transform_8, window_bounds = array<i64: 16, 32>}]} {
    %c0_i32 = arith.constant 0 : i32
    %0 = arith.cmpi eq, %arg0, %c0_i32 : i32
    %1 = arith.extui %0 : i1 to i32
    %c0_i32_0 = arith.constant 0 : i32
    %2 = arith.cmpi ne, %1, %c0_i32_0 : i32
    scf.if %2 {
      %cst_31 = arith.constant -1.000000e+30 : f32
      %67 = vector.broadcast %cst_31 : f32 to vector<1x3xf32>
      %c0_32 = arith.constant 0 : index
      %c0_33 = arith.constant 0 : index
      %68 = vector.load %arg10[%c0_32, %c0_33] : memref<1x3xf32, #tpu.memory_space<vmem>>, vector<1x3xf32>
      tpu.vector_store %arg10[%c0_32, %c0_33], %67 {strides = array<i32>} : memref<1x3xf32, #tpu.memory_space<vmem>>, vector<1x3xf32>,
      %cst_34 = arith.constant 0.000000e+00 : f32
      %69 = vector.broadcast %cst_34 : f32 to vector<16x99xf32>
      %c0_35 = arith.constant 0 : index
      %c0_36 = arith.constant 0 : index
      %70 = vector.load %arg11[%c0_35, %c0_36] : memref<16x99xf32, #tpu.memory_space<vmem>>, vector<16x99xf32>
      tpu.vector_store %arg11[%c0_35, %c0_36], %69 {strides = array<i32>} : memref<16x99xf32, #tpu.memory_space<vmem>>, vector<16x99xf32>,
    } else {
    }
    %c0 = arith.constant 0 : index
    %c0_1 = arith.constant 0 : index
    %3 = vector.load %arg1[%c0, %c0_1] : memref<128x64xf32, #tpu.memory_space<vmem>>, vector<128x64xf32>
    %c0_2 = arith.constant 0 : index
    %c0_3 = arith.constant 0 : index
    %4 = vector.load %arg3[%c0_2, %c0_3] : memref<128x3xf32, #tpu.memory_space<vmem>>, vector<128x3xf32>
    %c0_4 = arith.constant 0 : index
    %c0_5 = arith.constant 0 : index
    %5 = vector.load %arg5[%c0_4, %c0_5] : memref<64x288xf32, #tpu.memory_space<vmem>>, vector<64x288xf32>
    %c0_6 = arith.constant 0 : index
    %c0_7 = arith.constant 0 : index
    %6 = vector.load %arg6[%c0_6, %c0_7] : memref<1x288xf32, #tpu.memory_space<vmem>>, vector<1x288xf32>
    %c0_8 = arith.constant 0 : index
    %c0_9 = arith.constant 0 : index
    %7 = vector.load %arg7[%c0_8, %c0_9] : memref<288x99xf32, #tpu.memory_space<vmem>>, vector<288x99xf32>
    %c0_10 = arith.constant 0 : index
    %c0_11 = arith.constant 0 : index
    %8 = vector.load %arg8[%c0_10, %c0_11] : memref<1x99xf32, #tpu.memory_space<vmem>>, vector<1x99xf32>
    %cst = arith.constant dense<0.000000e+00> : vector<128x288xf32>
    %9 = tpu.matmul %3, %5, %cst {dimension_numbers = #tpu.dot_dimension_numbers<[1], [0], [0], [1], [0, 0, 1, 1], [], []>} : vector<128x64xf32>, vector<64x288xf32>, vector<128x288xf32> -> vector<128x288xf32>
    %10 = vector.broadcast %6 : vector<1x288xf32> to vector<128x288xf32>
    %11 = arith.addf %9, %10 : vector<128x288xf32>
    %cst_12 = arith.constant 0.000000e+00 : f32
    %12 = vector.broadcast %cst_12 : f32 to vector<128x288xf32>
    %13 = arith.cmpf oge, %11, %12 : vector<128x288xf32>
    %cst_13 = arith.constant 0.00999999977 : f32
    %14 = vector.broadcast %cst_13 : f32 to vector<128x288xf32>
    %15 = arith.mulf %14, %11 : vector<128x288xf32>
    %16 = arith.select %13, %11, %15 : vector<128x288xi1>, vector<128x288xf32>
    %cst_14 = arith.constant dense<0.000000e+00> : vector<128x99xf32>
    %17 = tpu.matmul %16, %7, %cst_14 {dimension_numbers = #tpu.dot_dimension_numbers<[1], [0], [0], [1], [0, 0, 1, 1], [], []>} : vector<128x288xf32>, vector<288x99xf32>, vector<128x99xf32> -> vector<128x99xf32>
    %18 = vector.broadcast %8 : vector<1x99xf32> to vector<128x99xf32>
    %19 = arith.addf %17, %18 : vector<128x99xf32>
    %20 = vector.extract_strided_slice %19 {offsets = [0, 0], sizes = [128, 96], strides = [1, 1]} : vector<128x99xf32> to vector<128x96xf32>
    %21 = vector.extract_strided_slice %19 {offsets = [0, 96], sizes = [128, 3], strides = [1, 1]} : vector<128x99xf32> to vector<128x3xf32>
    %cst_15 = arith.constant dense<0xFF800000> : vector<3xf32>
    %22 = vector.multi_reduction <maximumf>, %21, %cst_15 [0] : vector<128x3xf32> to vector<3xf32>
    %23 = vector.shape_cast %22 : vector<3xf32> to vector<1x3xf32>
    %c0_16 = arith.constant 0 : index
    %c0_17 = arith.constant 0 : index
    %24 = vector.load %arg10[%c0_16, %c0_17] : memref<1x3xf32, #tpu.memory_space<vmem>>, vector<1x3xf32>
    %25 = arith.maximumf %24, %23 : vector<1x3xf32>
    %c0_18 = arith.constant 0 : index
    %c0_19 = arith.constant 0 : index
    %26 = vector.load %arg10[%c0_18, %c0_19] : memref<1x3xf32, #tpu.memory_space<vmem>>, vector<1x3xf32>
    %27 = arith.subf %26, %25 : vector<1x3xf32>
    %28 = math.exp %27 : vector<1x3xf32>
    %c0_20 = arith.constant 0 : index
    %c0_21 = arith.constant 0 : index
    %29 = vector.load %arg10[%c0_20, %c0_21] : memref<1x3xf32, #tpu.memory_space<vmem>>, vector<1x3xf32>
    tpu.vector_store %arg10[%c0_20, %c0_21], %25 {strides = array<i32>} : memref<1x3xf32, #tpu.memory_space<vmem>>, vector<1x3xf32>,
    %30 = vector.broadcast %25 : vector<1x3xf32> to vector<128x3xf32>
    %31 = arith.subf %21, %30 : vector<128x3xf32>
    %32 = arith.addf %31, %4 : vector<128x3xf32>
    %33 = math.exp %32 : vector<128x3xf32>
    %34 = vector.extract_strided_slice %33 {offsets = [0, 0], sizes = [128, 1], strides = [1, 1]} : vector<128x3xf32> to vector<128x1xf32>
    %35 = vector.extract_strided_slice %20 {offsets = [0, 0], sizes = [128, 32], strides = [1, 1]} : vector<128x96xf32> to vector<128x32xf32>
    %36 = vector.broadcast %34 : vector<128x1xf32> to vector<128x32xf32>
    %37 = arith.mulf %36, %35 : vector<128x32xf32>
    %38 = vector.extract_strided_slice %33 {offsets = [0, 1], sizes = [128, 1], strides = [1, 1]} : vector<128x3xf32> to vector<128x1xf32>
    %39 = vector.extract_strided_slice %20 {offsets = [0, 32], sizes = [128, 32], strides = [1, 1]} : vector<128x96xf32> to vector<128x32xf32>
    %40 = vector.broadcast %38 : vector<128x1xf32> to vector<128x32xf32>
    %41 = arith.mulf %40, %39 : vector<128x32xf32>
    %42 = vector.extract_strided_slice %33 {offsets = [0, 2], sizes = [128, 1], strides = [1, 1]} : vector<128x3xf32> to vector<128x1xf32>
    %43 = vector.extract_strided_slice %20 {offsets = [0, 64], sizes = [128, 32], strides = [1, 1]} : vector<128x96xf32> to vector<128x32xf32>
    %44 = vector.broadcast %42 : vector<128x1xf32> to vector<128x32xf32>
    %45 = arith.mulf %44, %43 : vector<128x32xf32>
    %46 = tpu.concatenate %37, %41, %45, %33 in 1 : vector<128x32xf32>, vector<128x32xf32>, vector<128x32xf32>, vector<128x3xf32> -> vector<128x99xf32>
    %c0_22 = arith.constant 0 : index
    %c0_23 = arith.constant 0 : index
    %47 = vector.load %arg2[%c0_22, %c0_23] : memref<16x128xbf16, #tpu.memory_space<vmem>>, vector<16x128xbf16>
    %cst_24 = arith.constant dense<0.000000e+00> : vector<16x99xf32>
    %48 = tpu.matmul %47, %46, %cst_24 {dimension_numbers = #tpu.dot_dimension_numbers<[1], [0], [0], [1], [0, 0, 1, 1], [], []>} : vector<16x128xbf16>, vector<128x99xf32>, vector<16x99xf32> -> vector<16x99xf32>
    %49 = vector.extract_strided_slice %28 {offsets = [0, 0], sizes = [1, 1], strides = [1, 1]} : vector<1x3xf32> to vector<1x1xf32>
    %50 = vector.shape_cast %49 : vector<1x1xf32> to vector<1x1xf32>
    %51 = vector.broadcast %50 : vector<1x1xf32> to vector<1x32xf32>
    %52 = vector.extract_strided_slice %28 {offsets = [0, 1], sizes = [1, 1], strides = [1, 1]} : vector<1x3xf32> to vector<1x1xf32>
    %53 = vector.shape_cast %52 : vector<1x1xf32> to vector<1x1xf32>
    %54 = vector.broadcast %53 : vector<1x1xf32> to vector<1x32xf32>
    %55 = vector.extract_strided_slice %28 {offsets = [0, 2], sizes = [1, 1], strides = [1, 1]} : vector<1x3xf32> to vector<1x1xf32>
    %56 = vector.shape_cast %55 : vector<1x1xf32> to vector<1x1xf32>
    %57 = vector.broadcast %56 : vector<1x1xf32> to vector<1x32xf32>
    %58 = tpu.concatenate %51, %54, %57, %28 in 1 : vector<1x32xf32>, vector<1x32xf32>, vector<1x32xf32>, vector<1x3xf32> -> vector<1x99xf32>
    %c0_25 = arith.constant 0 : index
    %c0_26 = arith.constant 0 : index
    %59 = vector.load %arg11[%c0_25, %c0_26] : memref<16x99xf32, #tpu.memory_space<vmem>>, vector<16x99xf32>
    %60 = vector.broadcast %58 : vector<1x99xf32> to vector<16x99xf32>
    %61 = arith.mulf %59, %60 : vector<16x99xf32>
    %62 = arith.addf %61, %48 : vector<16x99xf32>
    %c0_27 = arith.constant 0 : index
    %c0_28 = arith.constant 0 : index
    %63 = vector.load %arg11[%c0_27, %c0_28] : memref<16x99xf32, #tpu.memory_space<vmem>>, vector<16x99xf32>
    tpu.vector_store %arg11[%c0_27, %c0_28], %62 {strides = array<i32>} : memref<16x99xf32, #tpu.memory_space<vmem>>, vector<16x99xf32>,
    %c0_i32_29 = arith.constant 0 : i32
    %64 = arith.cmpi eq, %arg0, %c0_i32_29 : i32
    %65 = arith.extui %64 : i1 to i32
    %c0_i32_30 = arith.constant 0 : i32
    %66 = arith.cmpi ne, %65, %c0_i32_30 : i32
    scf.if %66 {
      %c0_31 = arith.constant 0 : index
      %c0_32 = arith.constant 0 : index
      %67 = vector.load %arg11[%c0_31, %c0_32] : memref<16x99xf32, #tpu.memory_space<vmem>>, vector<16x99xf32>
      %68 = vector.extract_strided_slice %67 {offsets = [0, 96], sizes = [16, 3], strides = [1, 1]} : vector<16x99xf32> to vector<16x3xf32>
      %cst_33 = arith.constant 3.000000e+00 : f32
      %69 = vector.broadcast %cst_33 : f32 to vector<16x3xf32>
      %70 = arith.mulf %68, %69 : vector<16x3xf32>
      %cst_34 = arith.constant 3.000000e-10 : f32
      %71 = vector.broadcast %cst_34 : f32 to vector<16x3xf32>
      %72 = arith.addf %70, %71 : vector<16x3xf32>
      %c0_35 = arith.constant 0 : index
      %c0_36 = arith.constant 0 : index
      %73 = vector.load %arg4[%c0_35, %c0_36] : memref<16x32xf32, #tpu.memory_space<vmem>>, vector<16x32xf32>
      %74 = vector.extract_strided_slice %67 {offsets = [0, 0], sizes = [16, 32], strides = [1, 1]} : vector<16x99xf32> to vector<16x32xf32>
      %75 = vector.extract_strided_slice %72 {offsets = [0, 0], sizes = [16, 1], strides = [1, 1]} : vector<16x3xf32> to vector<16x1xf32>
      %76 = vector.broadcast %75 : vector<16x1xf32> to vector<16x32xf32>
      %77 = arith.divf %74, %76 : vector<16x32xf32>
      %78 = arith.addf %73, %77 : vector<16x32xf32>
      %79 = vector.extract_strided_slice %67 {offsets = [0, 32], sizes = [16, 32], strides = [1, 1]} : vector<16x99xf32> to vector<16x32xf32>
      %80 = vector.extract_strided_slice %72 {offsets = [0, 1], sizes = [16, 1], strides = [1, 1]} : vector<16x3xf32> to vector<16x1xf32>
      %81 = vector.broadcast %80 : vector<16x1xf32> to vector<16x32xf32>
      %82 = arith.divf %79, %81 : vector<16x32xf32>
      %83 = arith.addf %78, %82 : vector<16x32xf32>
      %84 = vector.extract_strided_slice %67 {offsets = [0, 64], sizes = [16, 32], strides = [1, 1]} : vector<16x99xf32> to vector<16x32xf32>
      %85 = vector.extract_strided_slice %72 {offsets = [0, 2], sizes = [16, 1], strides = [1, 1]} : vector<16x3xf32> to vector<16x1xf32>
      %86 = vector.broadcast %85 : vector<16x1xf32> to vector<16x32xf32>
      %87 = arith.divf %84, %86 : vector<16x32xf32>
      %88 = arith.addf %83, %87 : vector<16x32xf32>
      %c0_37 = arith.constant 0 : index
      %c0_38 = arith.constant 0 : index
      %89 = vector.load %arg9[%c0_37, %c0_38] : memref<16x32xf32, #tpu.memory_space<vmem>>, vector<16x32xf32>
      tpu.vector_store %arg9[%c0_37, %c0_38], %88 {strides = array<i32>} : memref<16x32xf32, #tpu.memory_space<vmem>>, vector<16x32xf32>,
    } else {
    }
    return
  }
  func.func @transform_0(%arg0: i32) -> (i32, i32) {
    %c0_i32 = arith.constant 0 : i32
    %c0_i32_0 = arith.constant 0 : i32
    return %arg0, %c0_i32 : i32, i32
  }
  func.func @transform_1(%arg0: i32) -> (i32, i32) {
    %c0_i32 = arith.constant 0 : i32
    %c0_i32_0 = arith.constant 0 : i32
    return %c0_i32, %arg0 : i32, i32
  }
  func.func @transform_2(%arg0: i32) -> (i32, i32) {
    %c0_i32 = arith.constant 0 : i32
    %c0_i32_0 = arith.constant 0 : i32
    return %arg0, %c0_i32 : i32, i32
  }
  func.func @transform_3(%arg0: i32) -> (i32, i32) {
    %c0_i32 = arith.constant 0 : i32
    %c0_i32_0 = arith.constant 0 : i32
    %c0_i32_1 = arith.constant 0 : i32
    return %c0_i32, %c0_i32_0 : i32, i32
  }
  func.func @transform_4(%arg0: i32) -> (i32, i32) {
    %c0_i32 = arith.constant 0 : i32
    %c0_i32_0 = arith.constant 0 : i32
    %c0_i32_1 = arith.constant 0 : i32
    return %c0_i32, %c0_i32_0 : i32, i32
  }
  func.func @transform_5(%arg0: i32) -> (i32, i32) {
    %c0_i32 = arith.constant 0 : i32
    %c0_i32_0 = arith.constant 0 : i32
    %c0_i32_1 = arith.constant 0 : i32
    return %c0_i32, %c0_i32_0 : i32, i32
  }
  func.func @transform_6(%arg0: i32) -> (i32, i32) {
    %c0_i32 = arith.constant 0 : i32
    %c0_i32_0 = arith.constant 0 : i32
    %c0_i32_1 = arith.constant 0 : i32
    return %c0_i32, %c0_i32_0 : i32, i32
  }
  func.func @transform_7(%arg0: i32) -> (i32, i32) {
    %c0_i32 = arith.constant 0 : i32
    %c0_i32_0 = arith.constant 0 : i32
    %c0_i32_1 = arith.constant 0 : i32
    return %c0_i32, %c0_i32_0 : i32, i32
  }
  func.func @transform_8(%arg0: i32) -> (i32, i32) {
    %c0_i32 = arith.constant 0 : i32
    %c0_i32_0 = arith.constant 0 : i32
    %c0_i32_1 = arith.constant 0 : i32
    return %c0_i32, %c0_i32_0 : i32, i32
  }
}

</mosaic_0001>

<bundles_post_ra>
// kernel: tpu_custom_call.1
= control target key start
LH: loop header
LB: loop body
LE: loop exit
PB: predicated region body
PF: predicated region fallthrough
CT: control target
= control target key end

     0   :  { %13 = vsyncpa [#allocation5], 0  ;;  %s2650_s0 = inlined_call_operand.vmem [shape: f32[128,64], index: 0, kind: input, shape index: {}]   ;;  %s2651_s1 = inlined_call_operand.vmem [shape: bf16[16,128], index: 1, kind: input, shape index: {}]   ;;  %s2652_s2 = inlined_call_operand.vmem [shape: f32[128,3], index: 2, kind: input, shape index: {}]   ;;  %s2653_s3 = inlined_call_operand.vmem [shape: f32[16,32], index: 3, kind: input, shape index: {}]   ;;  %s2654_s4 = inlined_call_operand.hbm [shape: f32[64,288], index: 4, kind: input, shape index: {}]   ;;  %s2655_s5 = inlined_call_operand.vmem [shape: f32[1,288], index: 5, kind: input, shape index: {}]   ;;  %s2656_s6 = inlined_call_operand.vmem [shape: f32[288,99], index: 6, kind: input, shape index: {}]   ;;  %s2657_s7 = inlined_call_operand.vmem [shape: f32[1,99], index: 7, kind: input, shape index: {}]   ;;  %s2658_s8 = inlined_call_operand.hbm [shape: f32[16,32], index: 8, kind: output, shape index: {}]  }
   0x1   :  { %14 = vsyncpa [#allocation6], 0  ;;  %s27_s29 = sshll.u32 %s2654_s4, 4  ;;  %s1733_s30 = smov [#allocation4]   ;;  %s28_s29 = int_to_ptr.hbm [resolvable:$true] %s27_s29 }
   0x2   :  { %s29_s9 = sshll.u32 %s1733_s30, 4  ;;  %s1734_s10 = smov 384   ;;  %s30_s9 = int_to_ptr.vmem [resolvable:$true] %s29_s9 }
   0x3   :  { %s1735_s11 = smov 24  }
   0x4   :  { %35 = dma.hbm_to_vmem [thread:$0]  %s28_s29, 3072, %s30_s9, [#allocation5], %s1734_s10, %s1734_s10, %s1735_s11  }
   0x5   :  { %1729 = dma.done.wait [#allocation5], 3072  }
   0x6   :  { %1730 = vsyncadd [#allocation5], 4294964224  ;;  %v108_v0 = vld [vmem:[#allocation4 + $0xa8] sm:$0xff]  ;;  %v105_v1 = vld [vmem:[#allocation4 + $0x90] sm:$0xff]  ;;  %vm156_vm0 = vcmask 523264   ;;  %s1736_s23 = smov 96  }
   0x7   :  { %213 = vmatpush.msra.mxu0 %v108_v0  ;;  %1580 = vmatpush.msra.mxu2 %v108_v0  ;;  %v109_v2 = vld [vmem:[#allocation4 + $0xb0] sm:$0xff]  ;;  %v102_v3 = vld [vmem:[#allocation4 + $0x78] sm:$0xff]  ;;  %v103_v5 = vld [vmem:[#allocation4 + $0x80] sm:$0xff]  ;;  %s1737_s9 = smov 32   ;;  %s1747_s10 = smov [#allocation7]  }
   0x8   :  { %278 = vmatpush.msra.mxu1 %v109_v2  ;;  %v106_v4 = vld [vmem:[#allocation4 + $0x98] sm:$0xff]  ;;  %1588 = vmatpush.msra.mxu3 %v109_v2  ;;  %v99_v6 = vld [vmem:[#allocation4 + $0x60] sm:$0xff]  ;;  %v100_v7 = vld [vmem:[#allocation4 + $0x68] sm:$0xff]  ;;  %s1496_s11 = sshll.u32 %s1747_s10, 4  ;;  %s1498_s13 = sshll.u32 %s2658_s8, 4  ;;  %s1497_s11 = int_to_ptr.vmem [resolvable:$true] %s1496_s11  ;;  %s1499_s13 = int_to_ptr.hbm [resolvable:$true] %s1498_s13 }
   0x9   :  { %214 = vmatpush.msra.mxu0 %v105_v1  ;;  %1581 = vmatpush.msra.mxu2 %v105_v1  ;;  %v96_v8 = vld [vmem:[#allocation4 + $0x48] sm:$0xff]  ;;  %v97_v9 = vld [vmem:[#allocation4 + $0x50] sm:$0xff]  ;;  %v94_v11 = vld [vmem:[#allocation4 + $0x38] sm:$0xff]  ;;  %s1748_s14 = smov 128   ;;  %s1749_s15 = smov 8  }
   0xa   :  { %279 = vmatpush.msra.mxu1 %v106_v4  ;;  %1589 = vmatpush.msra.mxu3 %v106_v4  ;;  %v93_v10 = vld [vmem:[#allocation4 + $0x30] sm:$0xff]  ;;  %v90_v12 = vld [vmem:[#allocation4 + $0x18] sm:$0xff]  ;;  %v91_v13 = vld [vmem:[#allocation4 + $0x20] sm:$0xff] }
   0xb   :  { %215 = vmatpush.msra.mxu0 %v102_v3  ;;  %1582 = vmatpush.msra.mxu2 %v102_v3  ;;  %v87_v14 = vld [vmem:[#allocation4] sm:$0xff]  ;;  %v1801_v15 = vld [vmem:[%s2650_s0] sm:$0xff]  ;;  %v1806_v16 = vld [vmem:[%s2650_s0 + $0x48] sm:$0xff] }
   0xc   :  { %280 = vmatpush.msra.mxu1 %v103_v5  ;;  %1590 = vmatpush.msra.mxu3 %v103_v5  ;;  %v88_v17 = vld [vmem:[#allocation4 + $0x8] sm:$0xff]  ;;  %v110_v18 = vld [vmem:[#allocation4 + $0xb8] sm:$0xff]  ;;  %v107_v19 = vld [vmem:[#allocation4 + $0xa0] sm:$0xff] }
   0xd   :  { %216 = vmatpush.msra.mxu0 %v99_v6  ;;  %1583 = vmatpush.msra.mxu2 %v99_v6  ;;  %v104_v20 = vld [vmem:[#allocation4 + $0x88] sm:$0xff]  ;;  %v101_v21 = vld [vmem:[#allocation4 + $0x70] sm:$0xff]  ;;  %v1822_v23 = vld [vmem:[%s2650_s0 + $0x50] sm:$0xff] }
   0xe   :  { %281 = vmatpush.msra.mxu1 %v100_v7  ;;  %1591 = vmatpush.msra.mxu3 %v100_v7  ;;  %v56_v22 = vld [vmem:[%s2650_s0 + $0x8] sm:$0xff]  ;;  %v57_v25 = vld [vmem:[%s2650_s0 + $0x10] sm:$0xff]  ;;  %v1836_v26 = vld [vmem:[%s2650_s0 + $0x58] sm:$0xff] }
   0xf   :  { %217 = vmatpush.msra.mxu0 %v96_v8  ;;  %1584 = vmatpush.msra.mxu2 %v96_v8  ;;  %v98_v24 = vld [vmem:[#allocation4 + $0x58] sm:$0xff]  ;;  %v95_v27 = vld [vmem:[#allocation4 + $0x40] sm:$0xff]  ;;  %v92_v28 = vld [vmem:[#allocation4 + $0x28] sm:$0xff] }
  0x10   :  { %282 = vmatpush.msra.mxu1 %v97_v9  ;;  %1592 = vmatpush.msra.mxu3 %v97_v9  ;;  %v89_v29 = vld [vmem:[#allocation4 + $0x10] sm:$0xff]  ;;  %v58_v30 = vld [vmem:[%s2650_s0 + $0x18] sm:$0xff]  ;;  %v1880_v35 = vld [vmem:[%s2650_s0 + $0x70] sm:$0xff] }
  0x11   :  { %218 = vmatpush.msra.mxu0 %v93_v10  ;;  %1585 = vmatpush.msra.mxu2 %v93_v10  ;;  %v1850_v31 = vld [vmem:[%s2650_s0 + $0x60] sm:$0xff]  ;;  %v1864_v33 = vld [vmem:[%s2650_s0 + $0x68] sm:$0xff]  ;;  %v1893_v36 = vld [vmem:[%s2650_s0 + $0x30] sm:$0xff] }
  0x12   :  { %283 = vmatpush.msra.mxu1 %v94_v11  ;;  %1593 = vmatpush.msra.mxu3 %v94_v11  ;;  %v59_v32 = vld [vmem:[%s2650_s0 + $0x20] sm:$0xff]  ;;  %v1875_v34 = vld [vmem:[%s2650_s0 + $0x28] sm:$0xff]  ;;  %v1898_v37 = vld [vmem:[%s2650_s0 + $0x78] sm:$0xff] }
  0x13   :  { %219 = vmatpush.msra.mxu0 %v90_v12  ;;  %1586 = vmatpush.msra.mxu2 %v90_v12  ;;  %v1911_v38 = vld [vmem:[%s2650_s0 + $0x38] sm:$0xff]  ;;  %v1922_v39 = vld [vmem:[%s2650_s0 + $0x40] sm:$0xff]  ;;  %v126_v41 = vld [vmem:[%s2656_s6 + $0x70] sm:$0xff] }
  0x14   :  { %284 = vmatpush.msra.mxu1 %v91_v13  ;;  %1594 = vmatpush.msra.mxu3 %v91_v13  ;;  %v127_v40 = vld [vmem:[%s2656_s6 + $0x78] sm:$0xff]  ;;  %v125_v42 = vld [vmem:[%s2656_s6 + $0x68] sm:$0xff]  ;;  %v124_v43 = vld [vmem:[%s2656_s6 + $0x60] sm:$0xff] }
  0x15   :  { %220 = vmatpush.msra.mxu0 %v87_v14  ;;  %1587 = vmatpush.msra.mxu2 %v87_v14  ;;  %v143_v44 = vld [vmem:[%s2656_s6 + $0xf8] sm:$0xff]  ;;  %v142_v46 = vld [vmem:[%s2656_s6 + $0xf0] sm:$0xff]  ;;  %v121_v48 = vld [vmem:[%s2656_s6 + $0x48] sm:$0xff] }
  0x16   :  { %1511 = vmatmul.msk.f32.vlgmr.msra.gmra.mxu0 %vm156_vm0, %v1801_v15  ;;  %1520 = vmatmul.msk.f32.vlgmr.msra.gmra.mxu2 %vm156_vm0, %v1806_v16  ;;  %v123_v45 = vld [vmem:[%s2656_s6 + $0x58] sm:$0xff]  ;;  %v122_v47 = vld [vmem:[%s2656_s6 + $0x50] sm:$0xff]  ;;  %v141_v49 = vld [vmem:[%s2656_s6 + $0xe8] sm:$0xff] }
  0x17   :  { %285 = vmatpush.msra.mxu1 %v88_v17  ;;  %343 = vmatpush.msrb.mxu2 %v110_v18  ;;  %v120_v50 = vld [vmem:[%s2656_s6 + $0x40] sm:$0xff]  ;;  %v119_v52 = vld [vmem:[%s2656_s6 + $0x38] sm:$0xff]  ;;  %v118_v54 = vld [vmem:[%s2656_s6 + $0x30] sm:$0xff] }
  0x18   :  { %1527 = vmatmul.msk.f32.vlgmr.msra.gmra.mxu1 %vm156_vm0, %v1801_v15  ;;  %1595 = vmatpush.msra.mxu3 %v88_v17  ;;  %v140_v51 = vld [vmem:[%s2656_s6 + $0xe0] sm:$0xff]  ;;  %v139_v53 = vld [vmem:[%s2656_s6 + $0xd8] sm:$0xff]  ;;  %v138_v55 = vld [vmem:[%s2656_s6 + $0xd0] sm:$0xff] }
  0x19   :  { %344 = vmatpush.msrb.mxu2 %v107_v19  ;;  %1536 = vmatmul.msk.f32.vlgmr.msra.gmra.mxu3 %vm156_vm0, %v1806_v16  ;;  %v117_v56 = vld [vmem:[%s2656_s6 + $0x28] sm:$0xff]  ;;  %v116_v58 = vld [vmem:[%s2656_s6 + $0x20] sm:$0xff]  ;;  %v115_v60 = vld [vmem:[%s2656_s6 + $0x18] sm:$0xff] }
  0x1a   :  { %596 = vmatpush.msrb.mxu3 %v127_v40  ;;  %661 = vmatpush.msrb.mxu0 %v143_v44  ;;  %v137_v57 = vld [vmem:[%s2656_s6 + $0xc8] sm:$0xff]  ;;  %v136_v59 = vld [vmem:[%s2656_s6 + $0xc0] sm:$0xff]  ;;  %v135_v61 = vld [vmem:[%s2656_s6 + $0xb8] sm:$0xff] }
  0x1b   :  { %345 = vmatpush.msrb.mxu2 %v104_v20  ;;  %v114_v62 = vld [vmem:[%s2656_s6 + $0x10] sm:$0xff]  ;;  %v113_v0 = vld [vmem:[%s2656_s6 + $0x8] sm:$0xff]  ;;  %v112_v2 = vld [vmem:[%s2656_s6] sm:$0xff] }
  0x1c   :  { %597 = vmatpush.msrb.mxu3 %v126_v41  ;;  %662 = vmatpush.msrb.mxu0 %v142_v46  ;;  %v134_v63 = vld [vmem:[%s2656_s6 + $0xb0] sm:$0xff]  ;;  %v133_v1 = vld [vmem:[%s2656_s6 + $0xa8] sm:$0xff]  ;;  %v132_v3 = vld [vmem:[%s2656_s6 + $0xa0] sm:$0xff] }
  0x1d   :  { %346 = vmatpush.msrb.mxu2 %v101_v21  ;;  %v131_v4 = vld [vmem:[%s2656_s6 + $0x98] sm:$0xff]  ;;  %v130_v5 = vld [vmem:[%s2656_s6 + $0x90] sm:$0xff]  ;;  %v129_v7 = vld [vmem:[%s2656_s6 + $0x88] sm:$0xff] }
  0x1e   :  { %1512 = vmatmul.msk.f32.gmra.mxu0 %vm156_vm0, %v56_v22  ;;  %1521 = vmatmul.msk.f32.gmra.mxu2 %vm156_vm0, %v1822_v23  ;;  %v147_v6 = vld [vmem:[%s2656_s6 + $0x118] sm:$0xff]  ;;  %v128_v8 = vld [vmem:[%s2656_s6 + $0x80] sm:$0xff]  ;;  %v146_v10 = vld [vmem:[%s2656_s6 + $0x110] sm:$0xff] }
  0x1f   :  { %347 = vmatpush.msrb.mxu2 %v98_v24  ;;  %598 = vmatpush.msrb.mxu3 %v125_v42  ;;  %v2040_v9 = vld [vmem:[%s2655_s5] sm:$0x7] }
  0x20   :  { %1528 = vmatmul.msk.f32.gmra.mxu1 %vm156_vm0, %v56_v22  ;;  %663 = vmatpush.msrb.mxu0 %v141_v49  ;;  %v2048_v11 = vperm.slane %v2040_v9, 0  ;;  %v2051_v12 = vperm.slane %v2040_v9, 1 }
  0x21   :  { %1537 = vmatmul.msk.f32.gmra.mxu3 %vm156_vm0, %v1822_v23  ;;  %348 = vmatpush.msrb.mxu2 %v95_v27 }
  0x22   :  { %599 = vmatpush.msrb.mxu3 %v124_v43  ;;  %664 = vmatpush.msrb.mxu0 %v140_v51 }
  0x23   :  { %349 = vmatpush.msrb.mxu2 %v92_v28  ;;  %738 = vmatpush.msrb.mxu1 %v147_v6 }
  0x24   :  { %600 = vmatpush.msrb.mxu3 %v123_v45  ;;  %665 = vmatpush.msrb.mxu0 %v139_v53 }
  0x25   :  { %350 = vmatpush.msrb.mxu2 %v89_v29  ;;  %739 = vmatpush.msrb.mxu1 %v146_v10  ;;  %v145_v29 = vld [vmem:[%s2656_s6 + $0x108] sm:$0xff] }
  0x26   :  { %1513 = vmatmul.msk.f32.gmra.mxu0 %vm156_vm0, %v57_v25  ;;  %1522 = vmatmul.msk.f32.gmra.mxu2 %vm156_vm0, %v1836_v26 }
  0x27   :  { %601 = vmatpush.msrb.mxu3 %v122_v47  ;;  %666 = vmatpush.msrb.mxu0 %v138_v55 }
  0x28   :  { %1529 = vmatmul.msk.f32.gmra.mxu1 %vm156_vm0, %v57_v25 }
  0x29   :  { %1538 = vmatmul.msk.f32.gmra.mxu3 %vm156_vm0, %v1836_v26  ;;  %667 = vmatpush.msrb.mxu0 %v137_v57 }
  0x2a   :  { %602 = vmatpush.msrb.mxu3 %v121_v48  ;;  %740 = vmatpush.msrb.mxu1 %v145_v29 }
  0x2b   :  { %668 = vmatpush.msrb.mxu0 %v136_v59 }
  0x2c   :  { %603 = vmatpush.msrb.mxu3 %v120_v50 }
  0x2d   :  { %669 = vmatpush.msrb.mxu0 %v135_v61 }
  0x2e   :  { %1514 = vmatmul.msk.f32.gmra.mxu0 %vm156_vm0, %v58_v30  ;;  %1523 = vmatmul.msk.f32.gmra.mxu2 %vm156_vm0, %v1850_v31 }
  0x2f   :  { %604 = vmatpush.msrb.mxu3 %v119_v52  ;;  %670 = vmatpush.msrb.mxu0 %v134_v63 }
  0x30   :  { %1530 = vmatmul.msk.f32.gmra.mxu1 %vm156_vm0, %v58_v30 }
  0x31   :  { %1539 = vmatmul.msk.f32.gmra.mxu3 %vm156_vm0, %v1850_v31  ;;  %671 = vmatpush.msrb.mxu0 %v133_v1 }
  0x32   :  { %605 = vmatpush.msrb.mxu3 %v118_v54 }
  0x33   :  { %672 = vmatpush.msrb.mxu0 %v132_v3 }
  0x34   :  { %606 = vmatpush.msrb.mxu3 %v117_v56 }
  0x35   :  { %673 = vmatpush.msrb.mxu0 %v131_v4 }
  0x36   :  { %1515 = vmatmul.msk.f32.gmra.mxu0 %vm156_vm0, %v59_v32  ;;  %1524 = vmatmul.msk.f32.gmra.mxu2 %vm156_vm0, %v1864_v33 }
  0x37   :  { %607 = vmatpush.msrb.mxu3 %v116_v58  ;;  %674 = vmatpush.msrb.mxu0 %v130_v5 }
  0x38   :  { %1531 = vmatmul.msk.f32.gmra.mxu1 %vm156_vm0, %v59_v32 }
  0x39   :  { %1540 = vmatmul.msk.f32.gmra.mxu3 %vm156_vm0, %v1864_v33  ;;  %675 = vmatpush.msrb.mxu0 %v129_v7 }
  0x3a   :  { %608 = vmatpush.msrb.mxu3 %v115_v60 }
  0x3b   :  { %676 = vmatpush.msrb.mxu0 %v128_v8 }
  0x3c   :  { %609 = vmatpush.msrb.mxu3 %v114_v62 }
  0x3e   :  { %1516 = vmatmul.msk.f32.gmra.mxu0 %vm156_vm0, %v1875_v34  ;;  %1525 = vmatmul.msk.f32.gmra.mxu2 %vm156_vm0, %v1880_v35 }
  0x3f   :  { %610 = vmatpush.msrb.mxu3 %v113_v0 }
  0x40   :  { %1532 = vmatmul.msk.f32.gmra.mxu1 %vm156_vm0, %v1875_v34 }
  0x41   :  { %1541 = vmatmul.msk.f32.gmra.mxu3 %vm156_vm0, %v1880_v35 }
  0x42   :  { %611 = vmatpush.msrb.mxu3 %v112_v2 }
  0x46   :  { %1517 = vmatmul.msk.f32.gmra.mxu0 %vm156_vm0, %v1893_v36  ;;  %1526 = vmatmul.msk.f32.gmra.mxu2 %vm156_vm0, %v1898_v37 }
  0x48   :  { %1533 = vmatmul.msk.f32.gmra.mxu1 %vm156_vm0, %v1893_v36 }
  0x49   :  { %1542 = vmatmul.msk.f32.gmra.mxu3 %vm156_vm0, %v1898_v37 }
  0x4e   :  { %1518 = vmatmul.msk.f32.gmra.mxu0 %vm156_vm0, %v1911_v38  ;;  %1543 = vmatmul.msk.f32.vlgmr.msrb.gmra.mxu2 %vm156_vm0, %v1801_v15 }
  0x50   :  { %1534 = vmatmul.msk.f32.gmra.mxu1 %vm156_vm0, %v1911_v38 }
  0x56   :  { %1519 = vmatmul.msk.f32.gmra.mxu0 %vm156_vm0, %v1922_v39  ;;  %1544 = vmatmul.msk.f32.gmra.mxu2 %vm156_vm0, %v56_v22 }
  0x58   :  { %1535 = vmatmul.msk.f32.gmra.mxu1 %vm156_vm0, %v1922_v39 }
  0x5e   :  { %1545 = vmatmul.msk.f32.gmra.mxu2 %vm156_vm0, %v57_v25 }
  0x66   :  { %1546 = vmatmul.msk.f32.gmra.mxu2 %vm156_vm0, %v58_v30 }
  0x6e   :  { %1547 = vmatmul.msk.f32.gmra.mxu2 %vm156_vm0, %v59_v32 }
  0x76   :  { %1548 = vmatmul.msk.f32.gmra.mxu2 %vm156_vm0, %v1875_v34 }
  0x7e   :  { %1549 = vmatmul.msk.f32.gmra.mxu2 %vm156_vm0, %v1893_v36 }
  0x86   :  { %1550 = vmatmul.msk.f32.gmra.mxu2 %vm156_vm0, %v1911_v38 }
  0x8e   :  { %1551 = vmatmul.msk.f32.gmra.mxu2 %vm156_vm0, %v1922_v39 }
  0x93   :  { %v222_v13 = vpop.f32.mrf.mxu0 }
  0x94   :  { %v223_v14 = vadd.f32 %v222_v13, %v2048_v11 }
  0x95   :  { %v287_v15 = vpop.f32.mrf.mxu1 }
  0x96   :  { %1552 = vmatmul.msk.f32.gmra.mxu2 %vm156_vm0, %v1806_v16  ;;  %vm400_vm1 = vcmp.ge.f32.partialorder %v223_v14, 0.0  ;;  %v448_v17 = vmul.f32 0.01, %v223_v14  ;;  %v288_v18 = vadd.f32 %v287_v15, %v2051_v12 }
  0x98   :  { %v496_v19 = vsel %vm400_vm1, %v223_v14, %v448_v17  ;;  %vm401_vm2 = vcmp.ge.f32.partialorder %v288_v18, 0.0  ;;  %v449_v20 = vmul.f32 0.01, %v288_v18 }
  0x99   :  { %v2057_v21 = vpop.f32.mrf.mxu2  ;;  %612 = vmatmul.f32.vlgmr.msrb.gmra.mxu3 %v496_v19 }
  0x9a   :  { %v497_v22 = vsel %vm401_vm2, %v288_v18, %v449_v20 }
  0x9b   :  { %v225_v24 = vpop.f32.mrf.mxu0  ;;  %677 = vmatmul.f32.vlgmr.msrb.gmra.mxu0 %v497_v22 }
  0x9c   :  { %v226_v25 = vadd.f32 %v225_v24, %v2048_v11 }
  0x9d   :  { %v290_v27 = vpop.f32.mrf.mxu1 }
  0x9e   :  { %1553 = vmatmul.msk.f32.gmra.mxu2 %vm156_vm0, %v1822_v23  ;;  %vm403_vm3 = vcmp.ge.f32.partialorder %v226_v25, 0.0  ;;  %v451_v16 = vmul.f32 0.01, %v226_v25  ;;  %v291_v28 = vadd.f32 %v290_v27, %v2051_v12 }
  0xa0   :  { %v499_v30 = vsel %vm403_vm3, %v226_v25, %v451_v16  ;;  %vm404_vm4 = vcmp.ge.f32.partialorder %v291_v28, 0.0  ;;  %v452_v32 = vmul.f32 0.01, %v291_v28  ;;  %v314_v25 = vpop.f32.mrf.mxu3  ;;  %vm547_vm3 = vcmask 261120  }
  0xa1   :  { %v252_v34 = vpop.f32.mrf.mxu2  ;;  %615 = vmatmul.f32.gmra.mxu3 %v499_v30 }
  0xa2   :  { %v2067_v36 = vadd.f32 %v252_v34, %v2048_v11  ;;  %v500_v38 = vsel %vm404_vm4, %v291_v28, %v452_v32 }
  0xa3   :  { %v228_v39 = vpop.f32.mrf.mxu0  ;;  %680 = vmatmul.f32.gmra.mxu0 %v500_v38 }
  0xa4   :  { %v229_v23 = vadd.f32 %v228_v39, %v2048_v11 }
  0xa5   :  { %v293_v40 = vpop.f32.mrf.mxu1 }
  0xa6   :  { %1554 = vmatmul.msk.f32.gmra.mxu2 %vm156_vm0, %v1836_v26  ;;  %vm406_vm5 = vcmp.ge.f32.partialorder %v229_v23, 0.0  ;;  %v454_v41 = vmul.f32 0.01, %v229_v23  ;;  %v294_v42 = vadd.f32 %v293_v40, %v2051_v12 }
  0xa8   :  { %v502_v43 = vsel %vm406_vm5, %v229_v23, %v454_v41  ;;  %vm407_vm6 = vcmp.ge.f32.partialorder %v294_v42, 0.0  ;;  %v455_v44 = vmul.f32 0.01, %v294_v42 }
  0xa9   :  { %v255_v45 = vpop.f32.mrf.mxu2  ;;  %618 = vmatmul.f32.gmra.mxu3 %v502_v43  ;;  %v317_v43 = vpop.f32.mrf.mxu3 }
  0xaa   :  { %v2074_v46 = vadd.f32 %v255_v45, %v2048_v11  ;;  %v503_v47 = vsel %vm407_vm6, %v294_v42, %v455_v44 }
  0xab   :  { %v231_v48 = vpop.f32.mrf.mxu0  ;;  %683 = vmatmul.f32.gmra.mxu0 %v503_v47 }
  0xac   :  { %v232_v49 = vadd.f32 %v231_v48, %v2048_v11 }
  0xad   :  { %v296_v50 = vpop.f32.mrf.mxu1 }
  0xae   :  { %1555 = vmatmul.msk.f32.gmra.mxu2 %vm156_vm0, %v1850_v31  ;;  %vm409_vm7 = vcmp.ge.f32.partialorder %v232_v49, 0.0  ;;  %v457_v26 = vmul.f32 0.01, %v232_v49  ;;  %v297_v51 = vadd.f32 %v296_v50, %v2051_v12  ;;  %v144_v31 = vld [vmem:[%s2656_s6 + $0x100] sm:$0xff]  ;;  %v250_v50 = vadd.f32 %v2057_v21, %v2048_v11 }
  0xaf   :  { %741 = vmatpush.msrb.mxu1 %v144_v31 }
  0xb0   :  { %v505_v52 = vsel %vm409_vm7, %v232_v49, %v457_v26  ;;  %vm410_vm8 = vcmp.ge.f32.partialorder %v297_v51, 0.0  ;;  %v458_v53 = vmul.f32 0.01, %v297_v51  ;;  %vm427_vm7 = vcmp.ge.f32.partialorder %v250_v50, 0.0 }
  0xb1   :  { %v258_v54 = vpop.f32.mrf.mxu2  ;;  %621 = vmatmul.f32.gmra.mxu3 %v505_v52  ;;  %v315_v52 = vadd.f32 %v314_v25, %v2051_v12 }
  0xb2   :  { %v2081_v55 = vadd.f32 %v258_v54, %v2048_v11  ;;  %v506_v56 = vsel %vm410_vm8, %v297_v51, %v458_v53 }
  0xb3   :  { %v234_v57 = vpop.f32.mrf.mxu0  ;;  %686 = vmatmul.f32.gmra.mxu0 %v506_v56  ;;  %v476_v31 = vmul.f32 0.01, %v315_v52  ;;  %vm428_vm8 = vcmp.ge.f32.partialorder %v315_v52, 0.0 }
  0xb4   :  { %v235_v58 = vadd.f32 %v234_v57, %v2048_v11  ;;  %v475_v57 = vmul.f32 0.01, %v250_v50  ;;  %v484_v25 = vmul.f32 0.01, %v2081_v55 }
  0xb5   :  { %v299_v59 = vpop.f32.mrf.mxu1 }
  0xb6   :  { %1556 = vmatmul.msk.f32.gmra.mxu2 %vm156_vm0, %v1864_v33  ;;  %vm412_vm9 = vcmp.ge.f32.partialorder %v235_v58, 0.0  ;;  %v460_v60 = vmul.f32 0.01, %v235_v58  ;;  %v300_v61 = vadd.f32 %v299_v59, %v2051_v12  ;;  %v523_v59 = vsel %vm427_vm7, %v250_v50, %v475_v57 }
  0xb8   :  { %v508_v62 = vsel %vm412_vm9, %v235_v58, %v460_v60  ;;  %vm413_vm10 = vcmp.ge.f32.partialorder %v300_v61, 0.0  ;;  %v461_v63 = vmul.f32 0.01, %v300_v61  ;;  %v524_v60 = vsel %vm428_vm8, %v315_v52, %v476_v31 }
  0xb9   :  { %v261_v0 = vpop.f32.mrf.mxu2  ;;  %624 = vmatmul.f32.gmra.mxu3 %v508_v62 }
  0xba   :  { %v2091_v1 = vadd.f32 %v261_v0, %v2048_v11  ;;  %v509_v2 = vsel %vm413_vm10, %v300_v61, %v461_v63  ;;  %v318_v61 = vadd.f32 %v317_v43, %v2051_v12  ;;  %v478_v0 = vmul.f32 0.01, %v2067_v36 }
  0xbb   :  { %v237_v3 = vpop.f32.mrf.mxu0  ;;  %689 = vmatmul.f32.gmra.mxu0 %v509_v2  ;;  %vm430_vm10 = vcmp.ge.f32.partialorder %v2067_v36, 0.0 }
  0xbc   :  { %v238_v4 = vadd.f32 %v237_v3, %v2048_v11  ;;  %v479_v3 = vmul.f32 0.01, %v318_v61 }
  0xbd   :  { %v302_v5 = vpop.f32.mrf.mxu1 }
  0xbe   :  { %1557 = vmatmul.msk.f32.gmra.mxu2 %vm156_vm0, %v1880_v35  ;;  %vm415_vm11 = vcmp.ge.f32.partialorder %v238_v4, 0.0  ;;  %v463_v33 = vmul.f32 0.01, %v238_v4  ;;  %v303_v6 = vadd.f32 %v302_v5, %v2051_v12 }
  0xc0   :  { %v511_v7 = vsel %vm415_vm11, %v238_v4, %v463_v33  ;;  %vm416_vm12 = vcmp.ge.f32.partialorder %v303_v6, 0.0  ;;  %v464_v8 = vmul.f32 0.01, %v303_v6  ;;  %vm431_vm11 = vcmp.ge.f32.partialorder %v318_v61, 0.0 }
  0xc1   :  { %v264_v10 = vpop.f32.mrf.mxu2  ;;  %627 = vmatmul.f32.gmra.mxu3 %v511_v7  ;;  %v526_v33 = vsel %vm430_vm10, %v2067_v36, %v478_v0 }
  0xc2   :  { %v2098_v13 = vadd.f32 %v264_v10, %v2048_v11  ;;  %v512_v14 = vsel %vm416_vm12, %v303_v6, %v464_v8  ;;  %v527_v6 = vsel %vm431_vm11, %v318_v61, %v479_v3 }
  0xc3   :  { %v240_v15 = vpop.f32.mrf.mxu0  ;;  %692 = vmatmul.f32.gmra.mxu0 %v512_v14  ;;  %v481_v14 = vmul.f32 0.01, %v2074_v46 }
  0xc4   :  { %v241_v17 = vadd.f32 %v240_v15, %v2048_v11  ;;  %vm442_vm8 = vcmp.ge.f32.partialorder %v2098_v13, 0.0 }
  0xc5   :  { %v305_v18 = vpop.f32.mrf.mxu1 }
  0xc6   :  { %1558 = vmatmul.msk.f32.gmra.mxu2 %vm156_vm0, %v1898_v37  ;;  %vm418_vm13 = vcmp.ge.f32.partialorder %v241_v17, 0.0  ;;  %v466_v35 = vmul.f32 0.01, %v241_v17  ;;  %v306_v19 = vadd.f32 %v305_v18, %v2051_v12  ;;  %v2109_v37 = vperm.slane %v2040_v9, 2 }
  0xc8   :  { %v514_v20 = vsel %vm418_vm13, %v241_v17, %v466_v35  ;;  %vm419_vm14 = vcmp.ge.f32.partialorder %v306_v19, 0.0  ;;  %v467_v22 = vmul.f32 0.01, %v306_v19  ;;  %vm433_vm13 = vcmp.ge.f32.partialorder %v2074_v46, 0.0 }
  0xc9   :  { %v267_v24 = vpop.f32.mrf.mxu2  ;;  %630 = vmatmul.f32.gmra.mxu3 %v514_v20  ;;  %v529_v36 = vsel %vm433_vm13, %v2074_v46, %v481_v14 }
  0xca   :  { %v2105_v27 = vadd.f32 %v267_v24, %v2048_v11  ;;  %v515_v16 = vsel %vm419_vm14, %v306_v19, %v467_v22 }
  0xcb   :  { %v243_v28 = vpop.f32.mrf.mxu0  ;;  %695 = vmatmul.f32.gmra.mxu0 %v515_v16 }
  0xcc   :  { %v244_v29 = vadd.f32 %v243_v28, %v2048_v11  ;;  %vm445_vm11 = vcmp.ge.f32.partialorder %v2105_v27, 0.0 }
  0xcd   :  { %v308_v30 = vpop.f32.mrf.mxu1 }
  0xce   :  { %vm421_vm15 = vcmp.ge.f32.partialorder %v244_v29, 0.0  ;;  %v469_v32 = vmul.f32 0.01, %v244_v29  ;;  %v309_v34 = vadd.f32 %v308_v30, %v2051_v12 }
  0xd0   :  { %v517_v38 = vsel %vm421_vm15, %v244_v29, %v469_v32  ;;  %vm422_vm1 = vcmp.ge.f32.partialorder %v309_v34, 0.0  ;;  %v470_v39 = vmul.f32 0.01, %v309_v34 }
  0xd1   :  { %v352_v23 = vpop.f32.mrf.mxu2  ;;  %633 = vmatmul.f32.gmra.mxu3 %v517_v38 }
  0xd2   :  { %v353_v40 = vadd.f32 %v352_v23, %v2109_v37  ;;  %v518_v41 = vsel %vm422_vm1, %v309_v34, %v470_v39  ;;  %vm436_vm1 = vcmp.ge.f32.partialorder %v2081_v55, 0.0  ;;  %v487_v39 = vmul.f32 0.01, %v2091_v1 }
  0xd3   :  { %v246_v42 = vpop.f32.mrf.mxu0  ;;  %698 = vmatmul.f32.gmra.mxu0 %v518_v41  ;;  %v532_v46 = vsel %vm436_vm1, %v2081_v55, %v484_v25 }
  0xd4   :  { %vm402_vm2 = vcmp.ge.f32.partialorder %v353_v40, 0.0  ;;  %v450_v44 = vmul.f32 0.01, %v353_v40  ;;  %v247_v9 = vadd.f32 %v246_v42, %v2048_v11  ;;  %v320_v11 = vpop.f32.mrf.mxu3 }
  0xd5   :  { %v311_v45 = vpop.f32.mrf.mxu1  ;;  %v321_v7 = vadd.f32 %v320_v11, %v2051_v12 }
  0xd6   :  { %v498_v47 = vsel %vm402_vm2, %v353_v40, %v450_v44  ;;  %vm424_vm4 = vcmp.ge.f32.partialorder %v247_v9, 0.0  ;;  %v472_v48 = vmul.f32 0.01, %v247_v9  ;;  %v312_v49 = vadd.f32 %v311_v45, %v2051_v12 }
  0xd7   :  { %1559 = vmatmul.msk.f32.vlgmr.msrb.gmra.mxu1 %vm547_vm3, %v498_v47  ;;  %v482_v17 = vmul.f32 0.01, %v321_v7  ;;  %vm434_vm14 = vcmp.ge.f32.partialorder %v321_v7, 0.0  ;;  %v490_v47 = vmul.f32 0.01, %v2098_v13 }
  0xd8   :  { %v520_v26 = vsel %vm424_vm4, %v247_v9, %v472_v48  ;;  %vm425_vm5 = vcmp.ge.f32.partialorder %v312_v49, 0.0  ;;  %v473_v51 = vmul.f32 0.01, %v312_v49 }
  0xd9   :  { %v355_v53 = vpop.f32.mrf.mxu2  ;;  %636 = vmatmul.f32.gmra.mxu3 %v520_v26  ;;  %v530_v35 = vsel %vm434_vm14, %v321_v7, %v482_v17 }
  0xda   :  { %v356_v54 = vadd.f32 %v355_v53, %v2109_v37  ;;  %v521_v56 = vsel %vm425_vm5, %v312_v49, %v473_v51  ;;  %vm439_vm5 = vcmp.ge.f32.partialorder %v2091_v1, 0.0 }
  0xdb   :  { %701 = vmatmul.f32.gmra.mxu0 %v521_v56  ;;  %v535_v55 = vsel %vm439_vm5, %v2091_v1, %v487_v39  ;;  %v538_v1 = vsel %vm442_vm8, %v2098_v13, %v490_v47  ;;  %v493_v56 = vmul.f32 0.01, %v2105_v27  ;;  %vm50_vm8 = vcmask 16384  }
  0xdc   :  { %v453_v58 = vmul.f32 0.01, %v356_v54  ;;  %vm405_vm6 = vcmp.ge.f32.partialorder %v356_v54, 0.0  ;;  %v323_v5 = vpop.f32.mrf.mxu3 }
  0xdd   :  { %v324_v19 = vadd.f32 %v323_v5, %v2051_v12  ;;  %v541_v13 = vsel %vm445_vm11, %v2105_v27, %v493_v56 }
  0xde   :  { %v501_v21 = vsel %vm405_vm6, %v356_v54, %v453_v58 }
  0xdf   :  { %1560 = vmatmul.msk.f32.gmra.mxu1 %vm547_vm3, %v501_v21  ;;  %v485_v28 = vmul.f32 0.01, %v324_v19  ;;  %vm437_vm2 = vcmp.ge.f32.partialorder %v324_v19, 0.0 }
  0xe1   :  { %v358_v62 = vpop.f32.mrf.mxu2  ;;  %639 = vmatmul.f32.gmra.mxu3 %v523_v59  ;;  %v533_v30 = vsel %vm437_vm2, %v324_v19, %v485_v28 }
  0xe2   :  { %v359_v63 = vadd.f32 %v358_v62, %v2109_v37 }
  0xe3   :  { %704 = vmatmul.f32.gmra.mxu0 %v524_v60 }
  0xe4   :  { %v456_v2 = vmul.f32 0.01, %v359_v63  ;;  %vm408_vm9 = vcmp.ge.f32.partialorder %v359_v63, 0.0  ;;  %v326_v22 = vpop.f32.mrf.mxu3 }
  0xe5   :  { %v327_v32 = vadd.f32 %v326_v22, %v2051_v12 }
  0xe6   :  { %v504_v4 = vsel %vm408_vm9, %v359_v63, %v456_v2  ;;  %v2162_v63 = vld [vmem:[%s2657_s7] ss:$0 sm:$0xff] }
  0xe7   :  { %1561 = vmatmul.msk.f32.gmra.mxu1 %vm547_vm3, %v504_v4  ;;  %v488_v41 = vmul.f32 0.01, %v327_v32  ;;  %vm440_vm6 = vcmp.ge.f32.partialorder %v327_v32, 0.0 }
  0xe9   :  { %v361_v8 = vpop.f32.mrf.mxu2  ;;  %642 = vmatmul.f32.gmra.mxu3 %v526_v33  ;;  %v536_v43 = vsel %vm440_vm6, %v327_v32, %v488_v41 }
  0xea   :  { %v362_v10 = vadd.f32 %v361_v8, %v2109_v37 }
  0xeb   :  { %707 = vmatmul.f32.gmra.mxu0 %v527_v6 }
  0xec   :  { %v459_v15 = vmul.f32 0.01, %v362_v10  ;;  %vm411_vm12 = vcmp.ge.f32.partialorder %v362_v10, 0.0  ;;  %v329_v23 = vpop.f32.mrf.mxu3 }
  0xed   :  { %v330_v44 = vadd.f32 %v329_v23, %v2051_v12 }
  0xee   :  { %v507_v18 = vsel %vm411_vm12, %v362_v10, %v459_v15 }
  0xef   :  { %1562 = vmatmul.msk.f32.gmra.mxu1 %vm547_vm3, %v507_v18  ;;  %v491_v49 = vmul.f32 0.01, %v330_v44  ;;  %vm443_vm9 = vcmp.ge.f32.partialorder %v330_v44, 0.0 }
  0xf1   :  { %v364_v20 = vpop.f32.mrf.mxu2  ;;  %645 = vmatmul.f32.gmra.mxu3 %v529_v36  ;;  %v539_v51 = vsel %vm443_vm9, %v330_v44, %v491_v49  ;;  %vm1261_vm9 = vcmask 785408  }
  0xf2   :  { %v365_v24 = vadd.f32 %v364_v20, %v2109_v37 }
  0xf3   :  { %710 = vmatmul.f32.gmra.mxu0 %v530_v35 }
  0xf4   :  { %v462_v16 = vmul.f32 0.01, %v365_v24  ;;  %vm414_vm15 = vcmp.ge.f32.partialorder %v365_v24, 0.0  ;;  %v332_v50 = vpop.f32.mrf.mxu3 }
  0xf5   :  { %v333_v52 = vadd.f32 %v332_v50, %v2051_v12 }
  0xf6   :  { %v510_v29 = vsel %vm414_vm15, %v365_v24, %v462_v16 }
  0xf7   :  { %1563 = vmatmul.msk.f32.gmra.mxu1 %vm547_vm3, %v510_v29  ;;  %v494_v58 = vmul.f32 0.01, %v333_v52  ;;  %vm446_vm12 = vcmp.ge.f32.partialorder %v333_v52, 0.0 }
  0xf9   :  { %v367_v34 = vpop.f32.mrf.mxu2  ;;  %648 = vmatmul.f32.gmra.mxu3 %v532_v46  ;;  %v542_v11 = vsel %vm446_vm12, %v333_v52, %v494_v58 }
  0xfa   :  { %v368_v38 = vadd.f32 %v367_v34, %v2109_v37 }
  0xfb   :  { %713 = vmatmul.f32.gmra.mxu0 %v533_v30 }
  0xfc   :  { %v465_v40 = vmul.f32 0.01, %v368_v38  ;;  %vm417_vm4 = vcmp.ge.f32.partialorder %v368_v38, 0.0 }
  0xfe   :  { %v513_v42 = vsel %vm417_vm4, %v368_v38, %v465_v40 }
  0xff   :  { %1564 = vmatmul.msk.f32.gmra.mxu1 %vm547_vm3, %v513_v42 }
 0x101   :  { %v370_v9 = vpop.f32.mrf.mxu2  ;;  %651 = vmatmul.f32.gmra.mxu3 %v535_v55 }
 0x102   :  { %v371_v45 = vadd.f32 %v370_v9, %v2109_v37 }
 0x103   :  { %716 = vmatmul.f32.gmra.mxu0 %v536_v43 }
 0x104   :  { %v468_v48 = vmul.f32 0.01, %v371_v45  ;;  %vm420_vm7 = vcmp.ge.f32.partialorder %v371_v45, 0.0 }
 0x106   :  { %v516_v26 = vsel %vm420_vm7, %v371_v45, %v468_v48  ;;  %vm791_vm7 = vcmask 810752  }
 0x107   :  { %1565 = vmatmul.msk.f32.gmra.mxu1 %vm547_vm3, %v516_v26 }
 0x109   :  { %v373_v53 = vpop.f32.mrf.mxu2  ;;  %654 = vmatmul.f32.gmra.mxu3 %v538_v1 }
 0x10a   :  { %v374_v54 = vadd.f32 %v373_v53, %v2109_v37 }
 0x10b   :  { %719 = vmatmul.f32.gmra.mxu0 %v539_v51 }
 0x10c   :  { %v471_v57 = vmul.f32 0.01, %v374_v54  ;;  %vm423_vm10 = vcmp.ge.f32.partialorder %v374_v54, 0.0 }
 0x10e   :  { %v519_v31 = vsel %vm423_vm10, %v374_v54, %v471_v57  ;;  %vm52_vm10 = vcmask 809984  }
 0x10f   :  { %1566 = vmatmul.msk.f32.gmra.mxu1 %vm547_vm3, %v519_v31 }
 0x111   :  { %v376_v12 = vpop.f32.mrf.mxu2  ;;  %657 = vmatmul.f32.gmra.mxu3 %v541_v13 }
 0x112   :  { %v377_v21 = vadd.f32 %v376_v12, %v2109_v37 }
 0x113   :  { %722 = vmatmul.f32.gmra.mxu0 %v542_v11 }
 0x114   :  { %v474_v59 = vmul.f32 0.01, %v377_v21  ;;  %vm426_vm13 = vcmp.ge.f32.partialorder %v377_v21, 0.0 }
 0x116   :  { %v522_v60 = vsel %vm426_vm13, %v377_v21, %v474_v59 }
 0x117   :  { %1567 = vmatmul.msk.f32.gmra.mxu1 %vm547_vm3, %v522_v60 }
 0x118   :  { %v678_v61 = vpop.f32.mrf.mxu0 }
 0x119   :  { %v379_v62 = vpop.f32.mrf.mxu2 }
 0x11a   :  { %v380_v27 = vadd.f32 %v379_v62, %v2109_v37 }
 0x11c   :  { %v477_v0 = vmul.f32 0.01, %v380_v27  ;;  %v613_v2 = vpop.f32.mrf.mxu3  ;;  %vm429_vm14 = vcmp.ge.f32.partialorder %v380_v27, 0.0 }
 0x11d   :  { %v614_v3 = vadd.f32 %v2162_v63, %v613_v2 }
 0x11e   :  { %v525_v4 = vsel %vm429_vm14, %v380_v27, %v477_v0 }
 0x11f   :  { %v2166_v5 = vadd.f32 %v678_v61, %v614_v3  ;;  %1568 = vmatmul.msk.f32.gmra.mxu1 %vm547_vm3, %v525_v4 }
 0x120   :  { %v681_v33 = vpop.f32.mrf.mxu0 }
 0x121   :  { %v382_v6 = vpop.f32.mrf.mxu2 }
 0x122   :  { %v383_v7 = vadd.f32 %v382_v6, %v2109_v37 }
 0x124   :  { %v480_v8 = vmul.f32 0.01, %v383_v7  ;;  %v616_v10 = vpop.f32.mrf.mxu3  ;;  %vm432_vm15 = vcmp.ge.f32.partialorder %v383_v7, 0.0 }
 0x125   :  { %v617_v14 = vadd.f32 %v2162_v63, %v616_v10 }
 0x126   :  { %v528_v15 = vsel %vm432_vm15, %v383_v7, %v480_v8 }
 0x127   :  { %v682_v17 = vadd.f32 %v681_v33, %v617_v14  ;;  %1569 = vmatmul.msk.f32.gmra.mxu1 %vm547_vm3, %v528_v15 }
 0x128   :  { %v684_v18 = vpop.f32.mrf.mxu0 }
 0x129   :  { %v385_v36 = vpop.f32.mrf.mxu2 }
 0x12a   :  { %v386_v35 = vadd.f32 %v385_v36, %v2109_v37 }
 0x12c   :  { %v483_v19 = vmul.f32 0.01, %v386_v35  ;;  %v619_v20 = vpop.f32.mrf.mxu3  ;;  %vm435_vm1 = vcmp.ge.f32.partialorder %v386_v35, 0.0 }
 0x12d   :  { %v620_v22 = vadd.f32 %v2162_v63, %v619_v20 }
 0x12e   :  { %v531_v24 = vsel %vm435_vm1, %v386_v35, %v483_v19  ;;  %v75_v19 = vld [vmem:[%s2652_s2 + $0x20] sm:$0xff] }
 0x12f   :  { %v685_v25 = vadd.f32 %v684_v18, %v620_v22  ;;  %1570 = vmatmul.msk.f32.gmra.mxu1 %vm547_vm3, %v531_v24  ;;  %885 = vrot.lane.b32.xlu0 %v75_v19, %s1736_s23 }
 0x130   :  { %v687_v16 = vpop.f32.mrf.mxu0 }
 0x131   :  { %v388_v28 = vpop.f32.mrf.mxu2 }
 0x132   :  { %v389_v29 = vadd.f32 %v388_v28, %v2109_v37 }
 0x134   :  { %v486_v46 = vmul.f32 0.01, %v389_v29  ;;  %v622_v30 = vpop.f32.mrf.mxu3  ;;  %vm438_vm2 = vcmp.ge.f32.partialorder %v389_v29, 0.0 }
 0x135   :  { %v623_v32 = vadd.f32 %v2162_v63, %v622_v30 }
 0x136   :  { %v534_v34 = vsel %vm438_vm2, %v389_v29, %v486_v46  ;;  %v84_v29 = vld [vmem:[%s2652_s2 + $0x68] sm:$0xff] }
 0x137   :  { %v688_v38 = vadd.f32 %v687_v16, %v623_v32  ;;  %1571 = vmatmul.msk.f32.gmra.mxu1 %vm547_vm3, %v534_v34  ;;  %v81_v34 = vld [vmem:[%s2652_s2 + $0x50] sm:$0xff] }
 0x138   :  { %v690_v40 = vpop.f32.mrf.mxu0 }
 0x139   :  { %v391_v39 = vpop.f32.mrf.mxu2 }
 0x13a   :  { %v392_v23 = vadd.f32 %v391_v39, %v2109_v37 }
 0x13c   :  { %v489_v41 = vmul.f32 0.01, %v392_v23  ;;  %v625_v42 = vpop.f32.mrf.mxu3  ;;  %vm441_vm4 = vcmp.ge.f32.partialorder %v392_v23, 0.0 }
 0x13d   :  { %v626_v55 = vadd.f32 %v2162_v63, %v625_v42 }
 0x13e   :  { %v537_v43 = vsel %vm441_vm4, %v392_v23, %v489_v41 }
 0x13f   :  { %v691_v44 = vadd.f32 %v690_v40, %v626_v55  ;;  %1572 = vmatmul.msk.f32.gmra.mxu1 %vm547_vm3, %v537_v43 }
 0x140   :  { %v693_v49 = vpop.f32.mrf.mxu0 }
 0x141   :  { %v394_v9 = vpop.f32.mrf.mxu2 }
 0x142   :  { %v395_v45 = vadd.f32 %v394_v9, %v2109_v37 }
 0x144   :  { %v492_v47 = vmul.f32 0.01, %v395_v45  ;;  %v628_v48 = vpop.f32.mrf.mxu3  ;;  %vm444_vm5 = vcmp.ge.f32.partialorder %v395_v45, 0.0 }
 0x145   :  { %v629_v50 = vadd.f32 %v2162_v63, %v628_v48 }
 0x146   :  { %v540_v26 = vsel %vm444_vm5, %v395_v45, %v492_v47  ;;  %v71_v47 = vld [vmem:[%s2652_s2] sm:$0xff] }
 0x147   :  { %v694_v1 = vadd.f32 %v693_v49, %v629_v50  ;;  %1573 = vmatmul.msk.f32.gmra.mxu1 %vm547_vm3, %v540_v26  ;;  %877 = vrot.lane.b32.xlu1 %v71_v47, %s1736_s23 }
 0x148   :  { %v696_v57 = vpop.f32.mrf.mxu0 }
 0x149   :  { %v397_v51 = vpop.f32.mrf.mxu2 }
 0x14a   :  { %v398_v52 = vadd.f32 %v397_v51, %v2109_v37 }
 0x14c   :  { %vm447_vm6 = vcmp.ge.f32.partialorder %v398_v52, 0.0  ;;  %v495_v53 = vmul.f32 0.01, %v398_v52  ;;  %v631_v54 = vpop.f32.mrf.mxu3 }
 0x14d   :  { %v632_v56 = vadd.f32 %v2162_v63, %v631_v54 }
 0x14e   :  { %v543_v58 = vsel %vm447_vm6, %v398_v52, %v495_v53 }
 0x14f   :  { %v697_v31 = vadd.f32 %v696_v57, %v632_v56  ;;  %1574 = vmatmul.msk.f32.gmra.mxu1 %vm547_vm3, %v543_v58 }
 0x150   :  { %v699_v2 = vpop.f32.mrf.mxu0 }
 0x154   :  { %v743_v13 = vpop.f32.mrf.mxu1  ;;  %v634_v62 = vpop.f32.mrf.mxu3 }
 0x155   :  { %v2188_v11 = vadd.f32 %v743_v13, %v2166_v5  ;;  %v635_v40 = vadd.f32 %v2162_v63, %v634_v62 }
 0x157   :  { %v700_v48 = vadd.f32 %v699_v2, %v635_v40 }
 0x158   :  { %v702_v5 = vpop.f32.mrf.mxu0 }
 0x15c   :  { %v746_v12 = vpop.f32.mrf.mxu1  ;;  %v637_v33 = vpop.f32.mrf.mxu3 }
 0x15d   :  { %v2190_v21 = vadd.f32 %v746_v12, %v682_v17  ;;  %v638_v42 = vadd.f32 %v2162_v63, %v637_v33 }
 0x15f   :  { %v703_v50 = vadd.f32 %v702_v5, %v638_v42  ;;  %v793_v2 = vsel %vm791_vm7, %v2190_v21, -inf }
 0x160   :  { %v705_v10 = vpop.f32.mrf.mxu0 }
 0x164   :  { %v749_v59 = vpop.f32.mrf.mxu1  ;;  %v640_v8 = vpop.f32.mrf.mxu3 }
 0x165   :  { %v2192_v60 = vadd.f32 %v749_v59, %v685_v25  ;;  %v78_v25 = vld [vmem:[%s2652_s2 + $0x38] sm:$0xff]  ;;  %v641_v41 = vadd.f32 %v2162_v63, %v640_v8 }
 0x166   :  { %891 = vrot.lane.b32.xlu0 %v78_v25, %s1736_s23 }
 0x167   :  { %v706_v49 = vadd.f32 %v705_v10, %v641_v41 }
 0x168   :  { %v708_v18 = vpop.f32.mrf.mxu0 }
 0x16c   :  { %v752_v37 = vpop.f32.mrf.mxu1  ;;  %v643_v15 = vpop.f32.mrf.mxu3 }
 0x16d   :  { %v2194_v61 = vadd.f32 %v752_v37, %v688_v38  ;;  %v644_v55 = vadd.f32 %v2162_v63, %v643_v15 }
 0x16e   :  { %903 = vrot.lane.b32.xlu0 %v84_v29, %s1736_s23 }
 0x16f   :  { %v709_v26 = vadd.f32 %v708_v18, %v644_v55  ;;  %v795_v15 = vsel %vm791_vm7, %v2194_v61, -inf }
 0x170   :  { %v711_v20 = vpop.f32.mrf.mxu0 }
 0x174   :  { %v755_v27 = vpop.f32.mrf.mxu1  ;;  %v646_v36 = vpop.f32.mrf.mxu3 }
 0x175   :  { %v2196_v0 = vadd.f32 %v755_v27, %v691_v44  ;;  %v647_v43 = vadd.f32 %v2162_v63, %v646_v36  ;;  %v792_v27 = vsel %vm791_vm7, %v2188_v11, -inf }
 0x176   :  { %897 = vrot.lane.b32.xlu0 %v81_v34, %s1736_s23 }
 0x177   :  { %v712_v52 = vadd.f32 %v711_v20, %v647_v43 }
 0x178   :  { %v714_v16 = vpop.f32.mrf.mxu0 }
 0x17c   :  { %v758_v3 = vpop.f32.mrf.mxu1  ;;  %v649_v24 = vpop.f32.mrf.mxu3 }
 0x17d   :  { %v2198_v4 = vadd.f32 %v758_v3, %v694_v1  ;;  %v650_v9 = vadd.f32 %v2162_v63, %v649_v24  ;;  %v796_v3 = vsel %vm791_vm7, %v2196_v0, -inf }
 0x17f   :  { %v798_v57 = vsel %vm791_vm7, %v2198_v4, -inf  ;;  %v715_v58 = vadd.f32 %v714_v16, %v650_v9 }
 0x180   :  { %v717_v30 = vpop.f32.mrf.mxu0 }
 0x184   :  { %v761_v6 = vpop.f32.mrf.mxu1  ;;  %v652_v46 = vpop.f32.mrf.mxu3 }
 0x185   :  { %v2200_v7 = vadd.f32 %v761_v6, %v697_v31  ;;  %v653_v44 = vadd.f32 %v2162_v63, %v652_v46 }
 0x187   :  { %v718_v53 = vadd.f32 %v717_v30, %v653_v44  ;;  %v800_v33 = vsel %vm791_vm7, %v2200_v7, -inf }
 0x188   :  { %v720_v23 = vpop.f32.mrf.mxu0 }
 0x18c   :  { %v764_v14 = vpop.f32.mrf.mxu1  ;;  %v655_v38 = vpop.f32.mrf.mxu3 }
 0x18d   :  { %v656_v45 = vadd.f32 %v2162_v63, %v655_v38  ;;  %v2230_v54 = vadd.f32 %v764_v14, %v700_v48  ;;  %v794_v14 = vsel %vm791_vm7, %v2192_v60, -inf }
 0x18e   :  { %v801_v24 = vmax.f32 %v794_v14, %v800_v33  ;;  %v85_v33 = vld [vmem:[%s2652_s2 + $0x70] sm:$0xff] }
 0x18f   :  { %v721_v31 = vadd.f32 %v720_v23, %v656_v45 }
 0x190   :  { %v723_v5 = vpop.f32.mrf.mxu0 }
 0x194   :  { %v767_v17 = vpop.f32.mrf.mxu1  ;;  %v658_v1 = vpop.f32.mrf.mxu3 }
 0x195   :  { %v2236_v13 = vadd.f32 %v767_v17, %v703_v50  ;;  %v659_v12 = vadd.f32 %v2162_v63, %v658_v1  ;;  %v802_v63 = vsel %vm791_vm7, %v2230_v54, -inf  ;;  %v799_v17 = vmax.f32 %v793_v2, %v798_v57  ;;  %v76_v1 = vld [vmem:[%s2652_s2 + $0x28] sm:$0xff]  ;;  %v83_v57 = vld [vmem:[%s2652_s2 + $0x60] sm:$0xff] }
 0x196   :  { %v803_v25 = vmax.f32 %v795_v15, %v802_v63  ;;  %v80_v2 = vld [vmem:[%s2652_s2 + $0x48] sm:$0xff] }
 0x197   :  { %v804_v18 = vsel %vm791_vm7, %v2236_v13, -inf  ;;  %v724_v36 = vadd.f32 %v723_v5, %v659_v12  ;;  %v82_v5 = vld [vmem:[%s2652_s2 + $0x58] sm:$0xff] }
 0x19c   :  { %v770_v35 = vpop.f32.mrf.mxu1 }
 0x19d   :  { %v2232_v56 = vadd.f32 %v770_v35, %v706_v49 }
 0x19f   :  { %v806_v6 = vsel %vm791_vm7, %v2232_v56, -inf }
 0x1a0   :  { %v807_v16 = vmax.f32 %v799_v17, %v806_v6  ;;  %v79_v6 = vld [vmem:[%s2652_s2 + $0x40] sm:$0xff] }
 0x1a4   :  { %v773_v22 = vpop.f32.mrf.mxu1 }
 0x1a5   :  { %v2239_v59 = vadd.f32 %v773_v22, %v709_v26  ;;  %v797_v22 = vmax.f32 %v792_v27, %v796_v3  ;;  %v72_v26 = vld [vmem:[%s2652_s2 + $0x8] sm:$0xff]  ;;  %v77_v27 = vld [vmem:[%s2652_s2 + $0x30] sm:$0xff] }
 0x1a6   :  { %879 = vrot.lane.b32.xlu1 %v72_v26, %s1736_s23 }
 0x1a7   :  { %v808_v35 = vsel %vm791_vm7, %v2239_v59, -inf }
 0x1a8   :  { %v809_v34 = vmax.f32 %v801_v24, %v808_v35  ;;  %v1739_v35 = vmov 96  }
 0x1a9   :  { %1615 = vset.pattern.permute.xlu2 %v1739_v35  ;;  %1614 = vset.pattern.permute.xlu1 %v1739_v35 }
 0x1aa   :  { %1613 = vset.pattern.permute.xlu0 %v1739_v35 }
 0x1ac   :  { %v776_v28 = vpop.f32.mrf.mxu1 }
 0x1ad   :  { %v2241_v37 = vadd.f32 %v776_v28, %v712_v52  ;;  %v86_v52 = vld [vmem:[%s2652_s2 + $0x78] sm:$0xff] }
 0x1ae   :  { %887 = vrot.lane.b32.xlu1 %v76_v1, %s1736_s23 }
 0x1af   :  { %v810_v19 = vsel %vm791_vm7, %v2241_v37, -inf }
 0x1b0   :  { %v811_v38 = vmax.f32 %v803_v25, %v810_v19 }
 0x1b4   :  { %v779_v32 = vpop.f32.mrf.mxu1 }
 0x1b5   :  { %v2257_v8 = vadd.f32 %v779_v32, %v715_v58  ;;  %v805_v32 = vmax.f32 %v797_v22, %v804_v18  ;;  %v1738_v58 = vmov -1e+30  }
 0x1b6   :  { %907 = vrot.lane.b32.xlu1 %v86_v52, %s1736_s23  ;;  %51 = vst.msk [vmem:[#allocation2] sm:$0x1] %vm50_vm8, %v1738_v58 }
 0x1b7   :  { %v812_v29 = vsel %vm791_vm7, %v2257_v8, -inf }
 0x1b8   :  { %v813_v40 = vmax.f32 %v805_v32, %v812_v29 }
 0x1b9   :  { %v878_v19 = vpop.permute.xlu1 %877 }
 0x1bc   :  { %v782_v39 = vpop.f32.mrf.mxu1 }
 0x1bd   :  { %v2243_v62 = vadd.f32 %v782_v39, %v718_v53  ;;  %v74_v53 = vld [vmem:[%s2652_s2 + $0x18] sm:$0xff]  ;;  %v2331_v14 = vld [vmem:[#allocation2] sm:$0x1] }
 0x1be   :  { %901 = vrot.lane.b32.xlu1 %v83_v57, %s1736_s23 }
 0x1bf   :  { %v814_v20 = vsel %vm791_vm7, %v2243_v62, -inf }
 0x1c0   :  { %v815_v39 = vmax.f32 %v807_v16, %v814_v20 }
 0x1c2   :  { %v820_v55 = vmax.f32 %v813_v40, %v815_v39 }
 0x1c4   :  { %v785_v51 = vpop.f32.mrf.mxu1 }
 0x1c5   :  { %v2259_v10 = vadd.f32 %v785_v51, %v721_v31  ;;  %v73_v51 = vld [vmem:[%s2652_s2 + $0x10] sm:$0xff]  ;;  %v886_v31 = vpop.permute.xlu0 %885 }
 0x1c6   :  { %881 = vrot.lane.b32.xlu2 %v73_v51, %s1736_s23  ;;  %895 = vrot.lane.b32.xlu1 %v80_v2, %s1736_s23 }
 0x1c7   :  { %v816_v46 = vsel %vm791_vm7, %v2259_v10, -inf }
 0x1c8   :  { %v817_v41 = vmax.f32 %v809_v34, %v816_v46 }
 0x1cc   :  { %v788_v28 = vpop.f32.mrf.mxu1 }
 0x1cd   :  { %v2277_v30 = vadd.f32 %v788_v28, %v724_v36 }
 0x1ce   :  { %883 = vrot.lane.b32.xlu2 %v74_v53, %s1736_s23 }
 0x1cf   :  { %v818_v23 = vsel %vm791_vm7, %v2277_v30, -inf }
 0x1d0   :  { %v819_v42 = vmax.f32 %v811_v38, %v818_v23 }
 0x1d2   :  { %v821_v43 = vmax.f32 %v817_v41, %v819_v42 }
 0x1d4   :  { %v822_v44 = vmax.f32 %v820_v55, %v821_v43 }
 0x1d6   :  { %v823_v9 = vrot.slane %v822_v44, 4  ;;  %889 = vrot.lane.b32.xlu2 %v77_v27, %s1736_s23 }
 0x1d8   :  { %v824_v45 = vmax.f32 %v822_v44, %v823_v9  ;;  %v2306_v12 = vpop.permute.xlu0 %891 }
 0x1da   :  { %v825_v47 = vrot.slane %v824_v45, 2 }
 0x1dc   :  { %v826_v48 = vmax.f32 %v824_v45, %v825_v47 }
 0x1de   :  { %v827_v49 = vrot.slane %v826_v48, 1  ;;  %905 = vrot.lane.b32.xlu2 %v85_v33, %s1736_s23 }
 0x1e0   :  { %v828_v50 = vmax.f32 %v826_v48, %v827_v49  ;;  %v2316_v3 = vpop.permute.xlu0 %903 }
 0x1e2   :  { %831 = vrot.lane.b32.xlu0 %v828_v50, %s1737_s9 }
 0x1e6   :  { %899 = vrot.lane.b32.xlu2 %v82_v5, %s1736_s23 }
 0x1e8   :  { %v2325_v63 = vpop.permute.xlu0 %897 }
 0x1ee   :  { %893 = vrot.lane.b32.xlu2 %v79_v6, %s1736_s23 }
 0x218   :  { %v880_v22 = vpop.permute.xlu1 %879 }
 0x220   :  { %v882_v20 = vpop.permute.xlu2 %881  ;;  %v2346_v25 = vpop.permute.xlu1 %887 }
 0x228   :  { %v884_v24 = vpop.permute.xlu2 %883  ;;  %v908_v9 = vpop.permute.xlu1 %907 }
 0x230   :  { %v2362_v43 = vpop.permute.xlu2 %889 }
 0x238   :  { %v906_v53 = vpop.permute.xlu2 %905 }
 0x254   :  { %v832_v15 = vpop.permute.xlu0 %831 }
 0x255   :  { %v2335_v17 = vmax.f32 %v2331_v14, %v832_v15 }
 0x257   :  { %v835_v18 = vsub.f32 %v2331_v14, %v2335_v17  ;;  %839 = vst.msk [vmem:[#allocation2] sm:$0x1] %vm50_vm8, %v2335_v17  ;;  %v841_v36 = vperm.slane %v2335_v17, 0 }
 0x259   :  { %842 = vrot.lane.b32.xlu0 %v841_v36, %s1736_s23  ;;  %v1740_v36 = vmov 98  }
 0x2cb   :  { %v2348_v16 = vpop.permute.xlu0 %842 }
 0x2cc   :  { %v847_v28 = vsub.f32 %v2192_v60, %v2348_v16  ;;  %v846_v29 = vsub.f32 %v2190_v21, %v2348_v16  ;;  %v845_v46 = vsub.f32 %v2188_v11, %v2348_v16  ;;  %v849_v23 = vsub.f32 %v2196_v0, %v2348_v16 }
 0x2cd   :  { %v848_v41 = vsub.f32 %v2194_v61, %v2348_v16  ;;  %v860_v55 = vsub.f32 %v2277_v30, %v2348_v16  ;;  %v859_v1 = vsub.f32 %v2259_v10, %v2348_v16  ;;  %v858_v27 = vsub.f32 %v2243_v62, %v2348_v16 }
 0x2ce   :  { %v927_v32 = vadd.f32 %v882_v20, %v847_v28  ;;  %v926_v34 = vadd.f32 %v880_v22, %v846_v29  ;;  %v925_v38 = vadd.f32 %v878_v19, %v845_v46  ;;  %v929_v44 = vadd.f32 %v886_v31, %v849_v23  ;;  %v902_v22 = vpop.permute.xlu1 %901  ;;  %v900_v46 = vpop.permute.xlu2 %899 }
 0x2cf   :  { %v928_v45 = vadd.f32 %v884_v24, %v848_v41  ;;  %v940_v47 = vadd.f32 %v908_v9, %v860_v55  ;;  %v939_v57 = vadd.f32 %v906_v53, %v859_v1  ;;  %v938_v5 = vadd.f32 %v2316_v3, %v858_v27 }
 0x2d0   :  { %v945_v39 = vmul.f32 1.442695, %v927_v32  ;;  %v943_v40 = vmul.f32 1.442695, %v926_v34  ;;  %v941_v42 = vmul.f32 1.442695, %v925_v38  ;;  %v857_v15 = vsub.f32 %v2257_v8, %v2348_v16 }
 0x2d1   :  { %v949_v48 = vmul.f32 1.442695, %v929_v44  ;;  %v947_v49 = vmul.f32 1.442695, %v928_v45  ;;  %v971_v26 = vmul.f32 1.442695, %v940_v47  ;;  %v856_v28 = vsub.f32 %v2241_v37, %v2348_v16 }
 0x2d2   :  { %1635 = vpow2.f32 %v945_v39  ;;  %v969_v31 = vmul.f32 1.442695, %v939_v57  ;;  %v967_v6 = vmul.f32 1.442695, %v938_v5  ;;  %v1741_v20 = vmov 97  }
 0x2d3   :  { %1637 = vpow2.f32 %v943_v40  ;;  %v937_v3 = vadd.f32 %v902_v22, %v857_v15  ;;  %v936_v32 = vadd.f32 %v900_v46, %v856_v28  ;;  %v855_v38 = vsub.f32 %v2239_v59, %v2348_v16 }
 0x2d4   :  { %1639 = vpow2.f32 %v941_v42  ;;  %v854_v40 = vsub.f32 %v2232_v56, %v2348_v16  ;;  %v853_v9 = vsub.f32 %v2236_v13, %v2348_v16  ;;  %v850_v15 = vsub.f32 %v2198_v4, %v2348_v16 }
 0x2d5   :  { %1641 = vpow2.f32 %v949_v48  ;;  %v965_v24 = vmul.f32 1.442695, %v937_v3  ;;  %v963_v34 = vmul.f32 1.442695, %v936_v32  ;;  %v935_v23 = vadd.f32 %v2325_v63, %v855_v38 }
 0x2d6   :  { %1643 = vpow2.f32 %v947_v49  ;;  %v896_v42 = vpop.permute.xlu1 %895  ;;  %v894_v63 = vpop.permute.xlu2 %893  ;;  %v930_v22 = vadd.f32 %v2346_v25, %v850_v15  ;;  %v836_v28 = vmul.f32 1.442695, %v835_v18  ;;  %v1742_v18 = vmov 0  }
 0x2d7   :  { %1645 = vpow2.f32 %v971_v26  ;;  %v961_v41 = vmul.f32 1.442695, %v935_v23  ;;  %v934_v44 = vadd.f32 %v896_v42, %v854_v40  ;;  %v933_v48 = vadd.f32 %v894_v63, %v853_v9 }
 0x2d8   :  { %v2364_v50 = vpop.eup %1635  ;;  %1647 = vpow2.f32 %v969_v31  ;;  %v852_v26 = vsub.f32 %v2230_v54, %v2348_v16  ;;  %v851_v31 = vsub.f32 %v2200_v7, %v2348_v16  ;;  %v951_v3 = vmul.f32 1.442695, %v930_v22 }
 0x2d9   :  { %v2368_v51 = vpop.eup %1637  ;;  %985 = vperm.xlu2 %1615, %v2364_v50   ;;  %1649 = vpow2.f32 %v967_v6  ;;  %v959_v45 = vmul.f32 1.442695, %v934_v44  ;;  %v957_v49 = vmul.f32 1.442695, %v933_v48 }
 0x2da   :  { %v2371_v52 = vpop.eup %1639  ;;  %980 = vperm.xlu1 %1614, %v2368_v51   ;;  %1651 = vpow2.f32 %v965_v24  ;;  %v932_v53 = vadd.f32 %v2306_v12, %v852_v26  ;;  %v931_v5 = vadd.f32 %v2362_v43, %v851_v31 }
 0x2db   :  { %975 = vperm.xlu0 %1613, %v2371_v52   ;;  %v2375_v58 = vpop.eup %1641  ;;  %1653 = vpow2.f32 %v963_v34 }
 0x2dc   :  { %v2379_v2 = vpop.eup %1643  ;;  %1655 = vpow2.f32 %v961_v41  ;;  %v955_v57 = vmul.f32 1.442695, %v932_v53  ;;  %v953_v6 = vmul.f32 1.442695, %v931_v5  ;;  %v1743_v53 = vmov 2  }
 0x2dd   :  { %v2382_v33 = vpop.eup %1645  ;;  %1657 = vpow2.f32 %v959_v45  ;;  %v1744_v5 = vmov 1  }
 0x2de   :  { %v2390_v19 = vpop.eup %1647  ;;  %1659 = vpow2.f32 %v957_v49 }
 0x2df   :  { %v2398_v29 = vpop.eup %1649  ;;  %1661 = vpow2.f32 %v955_v57 }
 0x2e0   :  { %v2405_v39 = vpop.eup %1651  ;;  %1663 = vpow2.f32 %v953_v6 }
 0x2e1   :  { %995 = vperm.xlu2 %1615, %v2375_v58   ;;  %v2413_v55 = vpop.eup %1653  ;;  %1665 = vpow2.f32 %v951_v3 }
 0x2e2   :  { %990 = vperm.xlu1 %1614, %v2379_v2   ;;  %v2420_v47 = vpop.eup %1655  ;;  %1667 = vpow2.f32 %v836_v28 }
 0x2e3   :  { %1050 = vperm.xlu0 %1613, %v2382_v33   ;;  %v2427_v1 = vpop.eup %1657 }
 0x2e4   :  { %v2435_v27 = vpop.eup %1659 }
 0x2e5   :  { %v2443_v12 = vpop.eup %1661 }
 0x2e6   :  { %v2449_v24 = vpop.eup %1663 }
 0x2e7   :  { %v2454_v16 = vpop.eup %1665 }
 0x2e8   :  { %v1668_v17 = vpop.eup %1667 }
 0x2e9   :  { %1617 = vset.pattern.permute.xlu2 %v1740_v36 }
 0x2ea   :  { %1616 = vset.pattern.permute.xlu1 %v1741_v20  ;;  %1210 = vperm.xlu2 %1617, %v2382_v33  }
 0x2eb   :  { %1045 = vperm.xlu0 %1613, %v2390_v19   ;;  %1130 = vperm.xlu1 %1616, %v2382_v33  }
 0x2f2   :  { %1206 = vperm.xlu2 %1617, %v2390_v19  }
 0x2f3   :  { %1040 = vperm.xlu0 %1613, %v2398_v29   ;;  %1126 = vperm.xlu1 %1616, %v2390_v19  }
 0x2fa   :  { %1202 = vperm.xlu2 %1617, %v2398_v29  }
 0x2fb   :  { %1035 = vperm.xlu0 %1613, %v2405_v39   ;;  %1122 = vperm.xlu1 %1616, %v2398_v29  }
 0x302   :  { %1198 = vperm.xlu2 %1617, %v2405_v39  }
 0x303   :  { %1030 = vperm.xlu0 %1613, %v2413_v55   ;;  %1118 = vperm.xlu1 %1616, %v2405_v39  }
 0x30a   :  { %1194 = vperm.xlu2 %1617, %v2413_v55  }
 0x30b   :  { %1025 = vperm.xlu0 %1613, %v2420_v47   ;;  %1114 = vperm.xlu1 %1616, %v2413_v55  }
 0x312   :  { %1190 = vperm.xlu2 %1617, %v2420_v47  }
 0x313   :  { %1020 = vperm.xlu0 %1613, %v2427_v1   ;;  %1110 = vperm.xlu1 %1616, %v2420_v47  }
 0x31a   :  { %1186 = vperm.xlu2 %1617, %v2427_v1  }
 0x31b   :  { %1015 = vperm.xlu0 %1613, %v2435_v27   ;;  %1106 = vperm.xlu1 %1616, %v2427_v1  }
 0x322   :  { %1182 = vperm.xlu2 %1617, %v2435_v27  }
 0x323   :  { %1010 = vperm.xlu0 %1613, %v2443_v12   ;;  %1102 = vperm.xlu1 %1616, %v2435_v27  }
 0x32a   :  { %1178 = vperm.xlu2 %1617, %v2443_v12  }
 0x32b   :  { %1005 = vperm.xlu0 %1613, %v2449_v24   ;;  %1098 = vperm.xlu1 %1616, %v2443_v12  }
 0x332   :  { %1174 = vperm.xlu2 %1617, %v2449_v24  }
 0x333   :  { %1000 = vperm.xlu0 %1613, %v2454_v16   ;;  %1094 = vperm.xlu1 %1616, %v2449_v24   ;;  %v2459_v43 = vpop.permute.xlu2 %985 }
 0x33a   :  { %1170 = vperm.xlu2 %1617, %v2454_v16  }
 0x33b   :  { %1618 = vset.pattern.permute.xlu0 %v1741_v20  ;;  %1090 = vperm.xlu1 %1616, %v2454_v16   ;;  %v2464_v25 = vpop.permute.xlu2 %995 }
 0x33c   :  { %1086 = vperm.xlu0 %1618, %v2375_v58  }
 0x342   :  { %1620 = vset.pattern.permute.xlu2 %v1741_v20 }
 0x343   :  { %1619 = vset.pattern.permute.xlu1 %v1740_v36  ;;  %1082 = vperm.xlu2 %1620, %v2379_v2  }
 0x344   :  { %1621 = vset.pattern.permute.xlu0 %v1740_v36  ;;  %1166 = vperm.xlu1 %1619, %v2375_v58   ;;  %v1211_v46 = vpop.permute.xlu2 %1210 }
 0x345   :  { %1158 = vperm.xlu0 %1621, %v2364_v50   ;;  %v1228_v63 = vmul.f32 %v1211_v46, %v2277_v30  ;;  %v1324_v46 = vperm.slane %v1668_v17, 0 }
 0x34b   :  { %1078 = vperm.xlu2 %1620, %v2364_v50  }
 0x34c   :  { %1162 = vperm.xlu1 %1619, %v2379_v2   ;;  %v2478_v32 = vpop.permute.xlu1 %980  ;;  %v1207_v14 = vpop.permute.xlu2 %1206 }
 0x34d   :  { %1624 = vset.pattern.permute.xlu0 %v1742_v18  ;;  %v2480_v34 = vpop.permute.xlu0 %975  ;;  %v1227_v15 = vmul.f32 %v1207_v14, %v2259_v10 }
 0x34e   :  { %1310 = vperm.xlu0 %1624, %v1668_v17  }
 0x353   :  { %1623 = vset.pattern.permute.xlu2 %v1740_v36 }
 0x354   :  { %1622 = vset.pattern.permute.xlu1 %v1741_v20  ;;  %v2484_v38 = vpop.permute.xlu1 %990  ;;  %v1203_v23 = vpop.permute.xlu2 %1202  ;;  %1154 = vperm.xlu2 %1623, %v2368_v51  }
 0x355   :  { %v1051_v40 = vpop.permute.xlu0 %1050  ;;  %1074 = vperm.xlu1 %1622, %v2368_v51  }
 0x356   :  { %1628 = vset.pattern.permute.xlu0 %v1741_v20  ;;  %v1068_v44 = vmul.f32 %v1051_v40, %v2277_v30 }
 0x35c   :  { %1150 = vperm.xlu2 %1623, %v2371_v52   ;;  %v1199_v9 = vpop.permute.xlu2 %1198 }
 0x35d   :  { %v1046_v41 = vpop.permute.xlu0 %1045  ;;  %v1131_v42 = vpop.permute.xlu1 %1130  ;;  %1070 = vperm.xlu1 %1622, %v2371_v52  }
 0x35e   :  { %v1148_v45 = vmul.f32 %v1131_v42, %v2277_v30  ;;  %v1067_v6 = vmul.f32 %v1046_v41, %v2259_v10 }
 0x360   :  { %v1244_v48 = vsel %vm547_vm3, %v1068_v44, %v1148_v45 }
 0x361   :  { %v1260_v49 = vsel %vm156_vm0, %v1244_v48, %v1228_v63 }
 0x362   :  { %v1277_v26 = vsel %vm1261_vm9, %v1260_v49, %v2382_v33  ;;  %v1225_v49 = vmul.f32 %v1199_v9, %v2257_v8 }
 0x363   :  { %1286 = vmatpush.msra.mxu2 %v1277_v26 }
 0x364   :  { %1626 = vset.pattern.permute.xlu2 %v1743_v53  ;;  %v1195_v22 = vpop.permute.xlu2 %1194 }
 0x365   :  { %v1041_v57 = vpop.permute.xlu0 %1040  ;;  %v1127_v31 = vpop.permute.xlu1 %1126  ;;  %1625 = vset.pattern.permute.xlu1 %v1744_v5  ;;  %1320 = vperm.xlu2 %1626, %v1668_v17  }
 0x366   :  { %v1147_v30 = vmul.f32 %v1127_v31, %v2259_v10  ;;  %1315 = vperm.xlu1 %1625, %v1668_v17   ;;  %v1066_v41 = vmul.f32 %v1041_v57, %v2243_v62  ;;  %v1226_v10 = vmul.f32 %v1203_v23, %v2243_v62 }
 0x368   :  { %v1243_v3 = vsel %vm547_vm3, %v1067_v6, %v1147_v30  ;;  %v1224_v6 = vmul.f32 %v1195_v22, %v2241_v37 }
 0x369   :  { %v1259_v33 = vsel %vm156_vm0, %v1243_v3, %v1227_v15 }
 0x36a   :  { %v1276_v28 = vsel %vm1261_vm9, %v1259_v33, %v2390_v19 }
 0x36b   :  { %1287 = vmatpush.msra.mxu2 %v1276_v28 }
 0x36c   :  { %v1191_v44 = vpop.permute.xlu2 %1190 }
 0x36d   :  { %v1036_v18 = vpop.permute.xlu0 %1035  ;;  %v1123_v40 = vpop.permute.xlu1 %1122  ;;  %1627 = vset.pattern.permute.xlu2 %v1741_v20  ;;  %v1223_v28 = vmul.f32 %v1191_v44, %v2239_v59 }
 0x36e   :  { %v1146_v42 = vmul.f32 %v1123_v40, %v2243_v62  ;;  %1325 = vrot.lane.b32.xlu1 %v1324_v46, %s1736_s23  ;;  %v1065_v63 = vmul.f32 %v1036_v18, %v2257_v8 }
 0x36f   :  { %1629 = vset.pattern.permute.xlu1 %v1740_v36 }
 0x370   :  { %v1242_v14 = vsel %vm547_vm3, %v1066_v41, %v1146_v42 }
 0x371   :  { %v1258_v19 = vsel %vm156_vm0, %v1242_v14, %v1226_v10 }
 0x372   :  { %v1275_v17 = vsel %vm1261_vm9, %v1258_v19, %v2398_v29 }
 0x373   :  { %1288 = vmatpush.msra.mxu2 %v1275_v17 }
 0x374   :  { %v1187_v53 = vpop.permute.xlu2 %1186 }
 0x375   :  { %v1031_v20 = vpop.permute.xlu0 %1030  ;;  %v1119_v45 = vpop.permute.xlu1 %1118  ;;  %v1222_v10 = vmul.f32 %v1187_v53, %v2232_v56 }
 0x376   :  { %v1145_v48 = vmul.f32 %v1119_v45, %v2257_v8  ;;  %v1064_v31 = vmul.f32 %v1031_v20, %v2241_v37 }
 0x378   :  { %v1241_v62 = vsel %vm547_vm3, %v1065_v63, %v1145_v48 }
 0x379   :  { %v1257_v23 = vsel %vm156_vm0, %v1241_v62, %v1225_v49 }
 0x37a   :  { %v1274_v26 = vsel %vm1261_vm9, %v1257_v23, %v2405_v39 }
 0x37b   :  { %1289 = vmatpush.msra.mxu2 %v1274_v26 }
 0x37c   :  { %v1183_v46 = vpop.permute.xlu2 %1182 }
 0x37d   :  { %v1026_v57 = vpop.permute.xlu0 %1025  ;;  %v1115_v29 = vpop.permute.xlu1 %1114  ;;  %v1221_v63 = vmul.f32 %v1183_v46, %v2236_v13 }
 0x37e   :  { %v1144_v5 = vmul.f32 %v1115_v29, %v2241_v37  ;;  %v1063_v3 = vmul.f32 %v1026_v57, %v2239_v59 }
 0x380   :  { %v1240_v30 = vsel %vm547_vm3, %v1064_v31, %v1144_v5 }
 0x381   :  { %v1256_v8 = vsel %vm156_vm0, %v1240_v30, %v1224_v6 }
 0x382   :  { %v1273_v9 = vsel %vm1261_vm9, %v1256_v8, %v2413_v55 }
 0x383   :  { %1290 = vmatpush.msra.mxu2 %v1273_v9 }
 0x385   :  { %v1021_v15 = vpop.permute.xlu0 %1020  ;;  %v1111_v39 = vpop.permute.xlu1 %1110 }
 0x386   :  { %v1143_v33 = vmul.f32 %v1111_v39, %v2239_v59  ;;  %v1062_v41 = vmul.f32 %v1021_v15, %v2232_v56  ;;  %v1179_v59 = vpop.permute.xlu2 %1178 }
 0x387   :  { %v1220_v57 = vmul.f32 %v1179_v59, %v2230_v54 }
 0x388   :  { %v1239_v18 = vsel %vm547_vm3, %v1063_v3, %v1143_v33 }
 0x389   :  { %v1255_v37 = vsel %vm156_vm0, %v1239_v18, %v1223_v28 }
 0x38a   :  { %v1272_v22 = vsel %vm1261_vm9, %v1255_v37, %v2420_v47 }
 0x38b   :  { %1291 = vmatpush.msra.mxu2 %v1272_v22 }
 0x38d   :  { %v1016_v40 = vpop.permute.xlu0 %1015  ;;  %v1107_v55 = vpop.permute.xlu1 %1106 }
 0x38e   :  { %v1142_v42 = vmul.f32 %v1107_v55, %v2232_v56  ;;  %v1061_v20 = vmul.f32 %v1016_v40, %v2236_v13  ;;  %v1175_v62 = vpop.permute.xlu2 %1174  ;;  %v1057_v40 = vmul.f32 %v2464_v25, %v2196_v0  ;;  %v1055_v25 = vmul.f32 %v2459_v43, %v2192_v60 }
 0x38f   :  { %v1219_v9 = vmul.f32 %v1175_v62, %v2200_v7 }
 0x390   :  { %v1238_v14 = vsel %vm547_vm3, %v1062_v41, %v1142_v42 }
 0x391   :  { %v1254_v19 = vsel %vm156_vm0, %v1238_v14, %v1222_v10 }
 0x392   :  { %v1271_v44 = vsel %vm1261_vm9, %v1254_v19, %v2427_v1 }
 0x393   :  { %1292 = vmatpush.msra.mxu2 %v1271_v44 }
 0x395   :  { %v1011_v17 = vpop.permute.xlu0 %1010  ;;  %v1103_v47 = vpop.permute.xlu1 %1102 }
 0x396   :  { %v1141_v45 = vmul.f32 %v1103_v47, %v2236_v13  ;;  %v1060_v26 = vmul.f32 %v1011_v17, %v2230_v54  ;;  %v1171_v5 = vpop.permute.xlu2 %1170 }
 0x397   :  { %v1218_v28 = vmul.f32 %v1171_v5, %v2198_v4 }
 0x398   :  { %v1237_v48 = vsel %vm547_vm3, %v1061_v20, %v1141_v45 }
 0x399   :  { %v1253_v56 = vsel %vm156_vm0, %v1237_v48, %v1221_v63 }
 0x39a   :  { %v1270_v49 = vsel %vm1261_vm9, %v1253_v56, %v2435_v27  ;;  %v1054_v56 = vmul.f32 %v2478_v32, %v2190_v21 }
 0x39b   :  { %1293 = vmatpush.msra.mxu2 %v1270_v49 }
 0x39d   :  { %v1006_v23 = vpop.permute.xlu0 %1005  ;;  %v1099_v1 = vpop.permute.xlu1 %1098 }
 0x39e   :  { %v1140_v53 = vmul.f32 %v1099_v1, %v2230_v54  ;;  %v1059_v6 = vmul.f32 %v1006_v23, %v2200_v7  ;;  %v1083_v46 = vpop.permute.xlu2 %1082 }
 0x3a0   :  { %v1236_v29 = vsel %vm547_vm3, %v1060_v26, %v1140_v53  ;;  %v1053_v53 = vmul.f32 %v2480_v34, %v2188_v11 }
 0x3a1   :  { %v1252_v13 = vsel %vm156_vm0, %v1236_v29, %v1220_v57 }
 0x3a2   :  { %v1269_v31 = vsel %vm1261_vm9, %v1252_v13, %v2443_v12 }
 0x3a3   :  { %1294 = vmatpush.msra.mxu2 %v1269_v31 }
 0x3a5   :  { %v1095_v27 = vpop.permute.xlu1 %1094  ;;  %v1001_v30 = vpop.permute.xlu0 %1000 }
 0x3a6   :  { %v1139_v8 = vmul.f32 %v1095_v27, %v2200_v7  ;;  %v1058_v12 = vmul.f32 %v1001_v30, %v2198_v4  ;;  %v1079_v42 = vpop.permute.xlu2 %1078 }
 0x3a7   :  { %v1135_v19 = vmul.f32 %v1079_v42, %v2192_v60 }
 0x3a8   :  { %v1235_v15 = vsel %vm547_vm3, %v1059_v6, %v1139_v8 }
 0x3a9   :  { %v1251_v54 = vsel %vm156_vm0, %v1235_v15, %v1219_v9 }
 0x3aa   :  { %v1268_v39 = vsel %vm1261_vm9, %v1251_v54, %v2449_v24 }
 0x3ab   :  { %1295 = vmatpush.msra.mxu2 %v1268_v39 }
 0x3ad   :  { %v1091_v3 = vpop.permute.xlu1 %1090 }
 0x3ae   :  { %v1138_v33 = vmul.f32 %v1091_v3, %v2198_v4  ;;  %v1087_v37 = vpop.permute.xlu0 %1086  ;;  %v1155_v43 = vpop.permute.xlu2 %1154 }
 0x3af   :  { %v1137_v24 = vmul.f32 %v1087_v37, %v2196_v0 }
 0x3b0   :  { %v1234_v18 = vsel %vm547_vm3, %v1058_v12, %v1138_v33 }
 0x3b1   :  { %v1250_v7 = vsel %vm156_vm0, %v1234_v18, %v1218_v28  ;;  %v1233_v4 = vsel %vm547_vm3, %v1057_v40, %v1137_v24 }
 0x3b2   :  { %v1267_v22 = vsel %vm1261_vm9, %v1250_v7, %v2454_v16  ;;  %v1136_v16 = vmul.f32 %v1083_v46, %v2194_v61 }
 0x3b3   :  { %1296 = vmatpush.msra.mxu2 %v1267_v22 }
 0x3b6   :  { %v1167_v55 = vpop.permute.xlu1 %1166 }
 0x3b7   :  { %v1217_v41 = vmul.f32 %v1167_v55, %v2196_v0  ;;  %v1159_v14 = vpop.permute.xlu0 %1158  ;;  %v1056_v0 = vmul.f32 %v2484_v38, %v2194_v61 }
 0x3b8   :  { %v1215_v44 = vmul.f32 %v1159_v14, %v2192_v60  ;;  %v1745_v60 = vmov 0.0  }
 0x3b9   :  { %v1249_v10 = vsel %vm156_vm0, %v1233_v4, %v1217_v41  ;;  %v1232_v20 = vsel %vm547_vm3, %v1056_v0, %v1136_v16  ;;  %53 = vst.msk [vmem:[#allocation3] sm:$0xff] %vm52_vm10, %v1745_v60 }
 0x3ba   :  { %v1266_v59 = vsel %vm1261_vm9, %v1249_v10, %v2375_v58  ;;  %v1231_v58 = vsel %vm547_vm3, %v1055_v25, %v1135_v19  ;;  %54 = vst.msk [vmem:[#allocation3 + $0x8] sm:$0xff] %vm52_vm10, %v1745_v60 }
 0x3bb   :  { %1297 = vmatpush.msra.mxu2 %v1266_v59  ;;  %v1247_v63 = vsel %vm156_vm0, %v1231_v58, %v1215_v44 }
 0x3be   :  { %v1163_v17 = vpop.permute.xlu1 %1162 }
 0x3bf   :  { %v1216_v47 = vmul.f32 %v1163_v17, %v2194_v61  ;;  %v1264_v61 = vsel %vm1261_vm9, %v1247_v63, %v2364_v50  ;;  %v1151_v50 = vpop.permute.xlu2 %1150 }
 0x3c0   :  { %v1213_v32 = vmul.f32 %v1151_v50, %v2188_v11  ;;  %v1311_v5 = vpop.permute.xlu0 %1310  ;;  %v1331_v39 = vld [vmem:[#allocation3] sm:$0xff] }
 0x3c1   :  { %v1248_v45 = vsel %vm156_vm0, %v1232_v20, %v1216_v47  ;;  %v1313_v27 = vperm.slane %v1311_v5, 0  ;;  %v1332_v33 = vld [vmem:[#allocation3 + $0x8] sm:$0xff] }
 0x3c2   :  { %v1265_v48 = vsel %vm1261_vm9, %v1248_v45, %v2379_v2  ;;  %v1214_v2 = vmul.f32 %v1155_v43, %v2190_v21 }
 0x3c3   :  { %1298 = vmatpush.msra.mxu2 %v1265_v48 }
 0x3c5   :  { %1299 = vmatpush.msra.mxu2 %v1264_v61 }
 0x3c7   :  { %v1075_v38 = vpop.permute.xlu1 %1074  ;;  %v1321_v6 = vpop.permute.xlu2 %1320 }
 0x3c8   :  { %v1134_v49 = vmul.f32 %v1075_v38, %v2190_v21  ;;  %v1579_v21 = vld [vmem:[%s2651_s1] sm:$0xff]  ;;  %v1323_v30 = vperm.slane %v1321_v6, 0  ;;  %s1746_s1 = smov 64  }
 0x3ca   :  { %v1230_v62 = vsel %vm547_vm3, %v1054_v56, %v1134_v49 }
 0x3cb   :  { %v1246_v23 = vsel %vm156_vm0, %v1230_v62, %v1214_v2 }
 0x3cc   :  { %v1263_v1 = vsel %vm1261_vm9, %v1246_v23, %v2368_v51 }
 0x3cd   :  { %1300 = vmatpush.msra.mxu2 %v1263_v1 }
 0x3cf   :  { %v1071_v26 = vpop.permute.xlu1 %1070 }
 0x3d0   :  { %v1133_v57 = vmul.f32 %v1071_v26, %v2188_v11 }
 0x3d2   :  { %v1229_v29 = vsel %vm547_vm3, %v1053_v53, %v1133_v57 }
 0x3d3   :  { %v1245_v13 = vsel %vm156_vm0, %v1229_v29, %v1213_v32 }
 0x3d4   :  { %v1262_v51 = vsel %vm1261_vm9, %v1245_v13, %v2371_v52 }
 0x3d5   :  { %1301 = vmatpush.msra.mxu2 %v1262_v51 }
 0x3d6   :  { %1302 = vmatmul.bf16.vlgmr.msra.gmra.mxu2 %v1579_v21 }
 0x3d8   :  { %v1316_v31 = vpop.permute.xlu1 %1315 }
 0x3d9   :  { %v1318_v34 = vperm.slane %v1316_v31, 0 }
 0x3db   :  { %v1328_v11 = vsel %vm547_vm3, %v1313_v27, %v1318_v34 }
 0x3dc   :  { %v1329_v9 = vsel %vm156_vm0, %v1328_v11, %v1323_v30 }
 0x3e0   :  { %v1326_v8 = vpop.permute.xlu1 %1325 }
 0x3e1   :  { %v1330_v15 = vsel %vm1261_vm9, %v1329_v9, %v1326_v8 }
 0x3e2   :  { %v1333_v54 = vperm.slane %v1330_v15, 0 }
 0x3e4   :  { %v1334_v3 = vmul.f32 %v1333_v54, %v1331_v39  ;;  %v1335_v28 = vmul.f32 %v1333_v54, %v1332_v33 }
 0x459   :  { %v1303_v12 = vpop.f32.mrf.mxu2 }
 0x45a   :  { %v1336_v52 = vadd.f32 %v1334_v3, %v1303_v12 }
 0x45c   :  { %1339 = vst.msk [vmem:[#allocation3] sm:$0xff] %vm52_vm10, %v1336_v52 }
 0x461   :  { %v1305_v46 = vpop.f32.mrf.mxu2 }
 0x462   :  { %v1337_v18 = vadd.f32 %v1335_v28, %v1305_v46 }
 0x463   :  { %v2620_v37 = vld [vmem:[#allocation3] sm:$0xff] }
 0x464   :  { %1340 = vst.msk [vmem:[#allocation3 + $0x8] sm:$0xff] %vm52_vm10, %v1337_v18  ;;  %v1346_v7 = vmul.f32 3.0, %v2620_v37 }
 0x466   :  { %v1348_v22 = vadd.f32 3e-10, %v1346_v7 }
 0x468   :  { %1443 = vperm.xlu1 %1629, %v1348_v22   ;;  %1395 = vperm.xlu2 %1627, %v1348_v22  }
 0x46b   :  { %v2624_v24 = vld [vmem:[#allocation3 + $0x8] sm:$0xff] }
 0x46c   :  { %v1347_v40 = vmul.f32 3.0, %v2624_v24 }
 0x46e   :  { %v1349_v55 = vadd.f32 3e-10, %v1347_v40 }
 0x470   :  { %1399 = vperm.xlu0 %1628, %v1349_v55   ;;  %1631 = vset.pattern.permute.xlu1 %v1739_v35 }
 0x471   :  { %1630 = vset.pattern.permute.xlu2 %v1740_v36  ;;  %1354 = vperm.xlu1 %1631, %v1348_v22  }
 0x472   :  { %1447 = vperm.xlu2 %1630, %v1349_v55  }
 0x478   :  { %1633 = vset.pattern.permute.xlu0 %v1740_v36 }
 0x47a   :  { %1632 = vset.pattern.permute.xlu2 %v1739_v35 }
 0x47b   :  { %1359 = vperm.xlu2 %1632, %v1349_v55   ;;  %v1350_v55 = vld [vmem:[%s2653_s3] sm:$0xff] }
 0x4c2   :  { %v1396_v41 = vpop.permute.xlu2 %1395 }
 0x4c3   :  { %1669 = vrcp.f32 %v1396_v41  ;;  %v1413_v59 = vand.u32 2147483648, %v1396_v41  ;;  %v1411_v19 = vand.u32 2147483647, %v1396_v41  ;;  %vm1407_vm11 = vweird.f32 %v1396_v41 }
 0x4c5   :  { %v1414_v25 = vor.u32 1.1754944e-38, %v1413_v59  ;;  %vm1412_vm13 = vcmp.eq.f32.partialorder %v1411_v19, 8.507059e+37 }
 0x4c9   :  { %v1670_v4 = vpop.eup %1669 }
 0x4ca   :  { %v1403_v42 = vmul.f32 %v1670_v4, %v1396_v41  ;;  %vm1408_vm0 = vweird.f32 %v1670_v4 }
 0x4cb   :  { %vm1409_vm12 = vmor %vm1407_vm11, %vm1408_vm0 }
 0x4cc   :  { %v1404_v10 = vsub.f32 1.0, %v1403_v42  ;;  %v1448_v14 = vpop.permute.xlu2 %1447 }
 0x4cd   :  { %1671 = vrcp.f32 %v1448_v14  ;;  %v1476_v58 = vand.u32 2147483648, %v1448_v14  ;;  %v1474_v63 = vand.u32 2147483647, %v1448_v14  ;;  %vm1470_vm15 = vweird.f32 %v1448_v14 }
 0x4ce   :  { %v1405_v16 = vmul.f32 %v1670_v4, %v1404_v10 }
 0x4cf   :  { %v1477_v43 = vor.u32 1.1754944e-38, %v1476_v58  ;;  %vm1475_vm2 = vcmp.eq.f32.partialorder %v1474_v63, 8.507059e+37 }
 0x4d0   :  { %v1406_v44 = vadd.f32 %v1670_v4, %v1405_v16 }
 0x4d2   :  { %v1410_v0 = vsel %vm1409_vm12, %v1670_v4, %v1406_v44 }
 0x4d3   :  { %v1672_v36 = vpop.eup %1671  ;;  %v1415_v35 = vsel %vm1412_vm13, %v1414_v25, %v1410_v0 }
 0x4d4   :  { %v1466_v17 = vmul.f32 %v1672_v36, %v1448_v14  ;;  %v1416_v47 = vmul.f32 %v1415_v35, %v2620_v37  ;;  %vm1471_vm14 = vweird.f32 %v1672_v36 }
 0x4d5   :  { %vm1472_vm1 = vmor %vm1470_vm15, %vm1471_vm14  ;;  %v1360_v22 = vpop.permute.xlu2 %1359 }
 0x4d6   :  { %v1467_v20 = vsub.f32 1.0, %v1466_v17  ;;  %1434 = vrot.lane.b32.xlu0 %v1416_v47, %s1736_s23  ;;  %v1388_v0 = vand.u32 2147483648, %v1360_v22 }
 0x4d8   :  { %v1468_v45 = vmul.f32 %v1672_v36, %v1467_v20  ;;  %v1389_v35 = vor.u32 1.1754944e-38, %v1388_v0  ;;  %v1351_v20 = vld [vmem:[%s2653_s3 + $0x8] sm:$0xff] }
 0x4da   :  { %v1444_v48 = vpop.permute.xlu1 %1443  ;;  %v1469_v60 = vadd.f32 %v1672_v36, %v1468_v45 }
 0x4db   :  { %1673 = vrcp.f32 %v1444_v48  ;;  %v1461_v1 = vand.u32 2147483648, %v1444_v48  ;;  %v1459_v26 = vand.u32 2147483647, %v1444_v48  ;;  %vm1455_vm5 = vweird.f32 %v1444_v48 }
 0x4dc   :  { %v1473_v61 = vsel %vm1472_vm1, %v1672_v36, %v1469_v60  ;;  %vm1382_vm1 = vweird.f32 %v1360_v22 }
 0x4dd   :  { %v1478_v38 = vsel %vm1475_vm2, %v1477_v43, %v1473_v61  ;;  %v1462_v32 = vor.u32 1.1754944e-38, %v1461_v1  ;;  %vm1460_vm7 = vcmp.eq.f32.partialorder %v1459_v26, 8.507059e+37 }
 0x4de   :  { %v1479_v56 = vmul.f32 %v1478_v38, %v2624_v24 }
 0x4e0   :  { %1484 = vrot.lane.b32.xlu0 %v1479_v56, %s1746_s1 }
 0x4e1   :  { %v1674_v49 = vpop.eup %1673 }
 0x4e2   :  { %v1451_v2 = vmul.f32 %v1674_v49, %v1444_v48  ;;  %v1400_v62 = vpop.permute.xlu0 %1399  ;;  %vm1456_vm4 = vweird.f32 %v1674_v49 }
 0x4e3   :  { %1675 = vrcp.f32 %v1400_v62  ;;  %vm1457_vm6 = vmor %vm1455_vm5, %vm1456_vm4  ;;  %v1428_v5 = vand.u32 2147483648, %v1400_v62  ;;  %v1426_v27 = vand.u32 2147483647, %v1400_v62  ;;  %vm1422_vm9 = vweird.f32 %v1400_v62  ;;  %v1355_v15 = vpop.permute.xlu1 %1354 }
 0x4e4   :  { %v1452_v23 = vsub.f32 1.0, %v1451_v2  ;;  %1677 = vrcp.f32 %v1355_v15  ;;  %v1373_v33 = vand.u32 2147483648, %v1355_v15  ;;  %vm1367_vm12 = vweird.f32 %v1355_v15 }
 0x4e5   :  { %v1429_v11 = vor.u32 1.1754944e-38, %v1428_v5  ;;  %vm1427_vm0 = vcmp.eq.f32.partialorder %v1426_v27, 8.507059e+37  ;;  %v1371_v28 = vand.u32 2147483647, %v1355_v15  ;;  %1679 = vrcp.f32 %v1360_v22 }
 0x4e6   :  { %v1453_v50 = vmul.f32 %v1674_v49, %v1452_v23  ;;  %v1374_v18 = vor.u32 1.1754944e-38, %v1373_v33 }
 0x4e7   :  { %vm1372_vm14 = vcmp.eq.f32.partialorder %v1371_v28, 8.507059e+37 }
 0x4e8   :  { %v1454_v53 = vadd.f32 %v1674_v49, %v1453_v50 }
 0x4e9   :  { %v1676_v57 = vpop.eup %1675 }
 0x4ea   :  { %v1418_v29 = vmul.f32 %v1676_v57, %v1400_v62  ;;  %v1458_v21 = vsel %vm1457_vm6, %v1674_v49, %v1454_v53  ;;  %vm1423_vm8 = vweird.f32 %v1676_v57  ;;  %v1678_v54 = vpop.eup %1677 }
 0x4eb   :  { %v1463_v13 = vsel %vm1460_vm7, %v1462_v32, %v1458_v21  ;;  %vm1424_vm10 = vmor %vm1422_vm9, %vm1423_vm8  ;;  %v1363_v39 = vmul.f32 %v1678_v54, %v1355_v15  ;;  %vm1368_vm11 = vweird.f32 %v1678_v54  ;;  %v1680_v10 = vpop.eup %1679 }
 0x4ec   :  { %v1419_v51 = vsub.f32 1.0, %v1418_v29  ;;  %v1464_v31 = vmul.f32 %v1463_v13, %v2620_v37  ;;  %vm1369_vm13 = vmor %vm1367_vm12, %vm1368_vm11  ;;  %v1378_v16 = vmul.f32 %v1680_v10, %v1360_v22  ;;  %vm1383_vm15 = vweird.f32 %v1680_v10 }
 0x4ed   :  { %v1364_v3 = vsub.f32 1.0, %v1363_v39  ;;  %vm1384_vm2 = vmor %vm1382_vm1, %vm1383_vm15 }
 0x4ee   :  { %v1420_v34 = vmul.f32 %v1676_v57, %v1419_v51  ;;  %1482 = vrot.lane.b32.xlu2 %v1464_v31, %s1746_s1  ;;  %v1379_v19 = vsub.f32 1.0, %v1378_v16 }
 0x4ef   :  { %v1365_v12 = vmul.f32 %v1678_v54, %v1364_v3 }
 0x4f0   :  { %v1421_v6 = vadd.f32 %v1676_v57, %v1420_v34  ;;  %v1380_v44 = vmul.f32 %v1680_v10, %v1379_v19 }
 0x4f1   :  { %v1366_v52 = vadd.f32 %v1678_v54, %v1365_v12 }
 0x4f2   :  { %v1425_v30 = vsel %vm1424_vm10, %v1676_v57, %v1421_v6  ;;  %v1381_v25 = vadd.f32 %v1680_v10, %v1380_v44 }
 0x4f3   :  { %v1430_v8 = vsel %vm1427_vm0, %v1429_v11, %v1425_v30  ;;  %v1370_v46 = vsel %vm1369_vm13, %v1678_v54, %v1366_v52 }
 0x4f4   :  { %v1431_v9 = vmul.f32 %v1430_v8, %v2624_v24  ;;  %v1375_v7 = vsel %vm1372_vm14, %v1374_v18, %v1370_v46  ;;  %v1385_v36 = vsel %vm1384_vm2, %v1680_v10, %v1381_v25 }
 0x4f5   :  { %v1376_v40 = vmul.f32 %v1375_v7, %v2620_v37  ;;  %v1386_v37 = vand.u32 2147483647, %v1360_v22 }
 0x4f6   :  { %1436 = vrot.lane.b32.xlu1 %v1431_v9, %s1736_s23 }
 0x4f7   :  { %v1392_v41 = vadd.f32 %v1376_v40, %v1350_v55  ;;  %vm1387_vm4 = vcmp.eq.f32.partialorder %v1386_v37, 8.507059e+37 }
 0x4f8   :  { %v1390_v17 = vsel %vm1387_vm4, %v1389_v35, %v1385_v36 }
 0x4f9   :  { %v1391_v47 = vmul.f32 %v1390_v17, %v2624_v24 }
 0x4fb   :  { %v1393_v58 = vadd.f32 %v1391_v47, %v1351_v20 }
 0x548   :  { %v1435_v4 = vpop.permute.xlu0 %1434  ;;  %v1483_v14 = vpop.permute.xlu2 %1482 }
 0x549   :  { %v1440_v42 = vadd.f32 %v1435_v4, %v1392_v41 }
 0x54b   :  { %v1488_v59 = vadd.f32 %v1483_v14, %v1440_v42 }
 0x54d   :  { %1490 = vst.msk [vmem:[#allocation7] sm:$0xff] %vm547_vm3, %v1488_v59 }
 0x552   :  { %v1485_v48 = vpop.permute.xlu0 %1484 }
 0x568   :  { %v1437_v45 = vpop.permute.xlu1 %1436 }
 0x569   :  { %v1441_v63 = vadd.f32 %v1437_v45, %v1393_v58 }
 0x56b   :  { %v1489_v60 = vadd.f32 %v1485_v48, %v1441_v63 }
 0x56d   :  { %1491 = vst.msk [vmem:[#allocation7 + $0x8] sm:$0xff] %vm547_vm3, %v1489_v60 }
 0x56e   :  { %1504 = dma.vmem_to_hbm [thread:$0]  %s1497_s11, 256, %s1499_s13, [#allocation6], %s1748_s14, %s1748_s14, %s1749_s15  }
 0x56f   :  { %1731 = dma.done.wait [#allocation6], 256  }
 0x570   :  { %1732 = vsyncadd [#allocation6], 4294967040 }
 0x571   :  { %1509 = vsyncpa [#allocation5], 1 }
 0x572   :  { %1510 = vsyncpa [#allocation6], 1 }

</bundles_post_ra>
